<compile_context>
chip_gen: v7x
topology: tpu7x:2x2x1
jax: 0.10.0
libtpu: 0.0.40
codegen_flags: <defaults>
</compile_context>

<pallas_src>
import functools

import jax
import jax.numpy as jnp
import numpy as np
from jax import lax
from jax.experimental import pallas as pl
from jax.experimental.pallas import tpu as pltpu

# Model geometry (small, deterministic instantiation of the FModule).
C_IN, C_OUT, H, W, N_CLASSES = 4, 8, 16, 16, 10
HW = H * W                      # 256 spatial positions
KPAD = 40                       # im2col contraction dim: C_IN*9 + 1 (bias) = 37 -> 40
NPAD = 128                      # class dim padded 10 -> 128 (lane-dense output)
B_TILE = 8                      # samples per forward grid step
LANE = 128


# ---------------------------------------------------------------------------
# Pallas kernels
# ---------------------------------------------------------------------------
def _fused_forward_kernel(p_ref, wct_ref, fcw_ref, fcb_ref, o_ref):
    """Fused conv(3x3,pad=1)+bias+ReLU -> flatten -> FC for one batch tile.

    p_ref:   (B_TILE, KPAD, HW)  im2col^T patches; row 36 of dim-1 == 1.0 (bias)
    wct_ref: (C_OUT, KPAD)       conv weight rows, col 36 == conv bias
    fcw_ref: (C_OUT*HW, NPAD)    fc weight, native PyTorch layout, zero-padded cols
    fcb_ref: (1, NPAD)           fc bias (zero-padded)
    o_ref:   (B_TILE, NPAD)      logits (zero-padded), full-vreg unmasked store
    """
    b_tile = p_ref.shape[0]
    c_out = wct_ref.shape[0]

    rows = []
    for b in range(b_tile):                                      # static unroll (8)
        # Conv as matmul, channel-major output: (C_OUT, KPAD) @ (KPAD, HW).
        yt = jnp.dot(wct_ref[...], p_ref[b],
                     preferred_element_type=jnp.float32)         # (C_OUT, HW)
        yt = jnp.maximum(yt, 0.0)                                # ReLU
        # PyTorch .view(N, -1) flatten of NCHW == channel-major concat of rows.
        rows.append(jnp.concatenate([yt[c:c + 1, :] for c in range(c_out)],
                                    axis=1))                     # (1, C_OUT*HW)
    feat = jnp.concatenate(rows, axis=0)                         # (B_TILE, C_OUT*HW)

    # Single FC matmul: M=B_TILE, K=C_OUT*HW, N=NPAD.
    out = jnp.dot(feat, fcw_ref[...],
                  preferred_element_type=jnp.float32) + fcb_ref[...]
    o_ref[...] = out.astype(o_ref.dtype)


def _ewc_reg_kernel(k_ref, p_ref, q_ref, acc_ref, *, rows_valid, tiles_per_core):
    """Tiled sum( importance * (p - q)^2 ).

    The output block (1, 8, 128) is revisited across the inner (reduction)
    grid axis and acts as a one-vreg accumulator.  Rows past `rows_valid`
    (partial last block of a cdiv grid) are masked by global row index.
    """
    o = pl.program_id(0)
    i = pl.program_id(1)

    @pl.when(i == 0)
    def _init():
        acc_ref[...] = jnp.zeros_like(acc_ref)

    d = p_ref[...] - q_ref[...]
    term = k_ref[...] * d * d                                    # (tile_rows, 128)

    tile_rows = term.shape[0]
    row0 = (o * tiles_per_core + i) * tile_rows
    rid = row0 + lax.broadcasted_iota(jnp.int32, term.shape, 0)
    term = jnp.where(rid < rows_valid, term, 0.0)

    # Fold row-groups of 8 into the single-vreg accumulator (pure VPU adds).
    acc_ref[0] += jnp.sum(term.reshape(tile_rows // 8, 8, term.shape[1]), axis=0)


# ---------------------------------------------------------------------------
# Wrappers
# ---------------------------------------------------------------------------
def prepare_forward_weights(params):
    """One-time repack of the model weights into kernel-friendly constants."""
    c_out, c_in, kh, kw = params["conv_w"].shape
    k = c_in * kh * kw                                           # 36
    wct = params["conv_w"].astype(jnp.float32).reshape(c_out, k)
    wct = jnp.concatenate(
        [wct, params["conv_b"].astype(jnp.float32)[:, None]], axis=1)   # bias column
    wct = jnp.pad(wct, ((0, 0), (0, KPAD - (k + 1))))            # (C_OUT, KPAD)

    fcw = jnp.pad(params["fc_w"].astype(jnp.float32),
                  ((0, 0), (0, NPAD - N_CLASSES)))               # (C_OUT*HW, NPAD)
    fcb = jnp.pad(params["fc_b"].astype(jnp.float32),
                  (0, NPAD - N_CLASSES)).reshape(1, NPAD)        # (1, NPAD)
    return {"wct": wct, "fcw": fcw, "fcb": fcb}


def im2col_T(x):
    """x: (N, C, H, W) -> (N, KPAD, H*W) transposed patches; row C*9 is all-ones
    (folds the conv bias into the matmul), remaining rows zero-padded."""
    n, c, h, w = x.shape
    xp = jnp.pad(x, ((0, 0), (0, 0), (1, 1), (1, 1)))
    cols = [xp[:, :, i:i + h, j:j + w] for i in range(3) for j in range(3)]
    p = jnp.stack(cols, axis=2)                  # (N, C, 9, H, W) — kh*3+kw inner
    p = p.reshape(n, c * 9, h * w)               # (N, 36, HW), channel-major rows
    ones = jnp.ones((n, 1, h * w), p.dtype)      # bias row
    p = jnp.concatenate([p, ones], axis=1)       # (N, 37, HW)
    return jnp.pad(p, ((0, 0), (0, KPAD - (c * 9 + 1)), (0, 0)))   # (N, 40, HW)
    # TODO(synk): building the 3x3 halo patches in-kernel with pltpu.roll would
    # remove the im2col HBM blow-up entirely (left as a follow-up).


def ewc_forward(prepared, x):
    """EWC.forward(x) == self.model(x), fully fused in a single pallas_call."""
    n = x.shape[0]
    c_out = prepared["wct"].shape[0]
    patches = im2col_T(x.astype(jnp.float32))    # (N, KPAD, HW)

    nt = pl.cdiv(n, B_TILE)
    n_pad = nt * B_TILE
    if n_pad != n:
        patches = jnp.pad(patches, ((0, n_pad - n), (0, 0), (0, 0)))

    out = pl.pallas_call(
        _fused_forward_kernel,
        out_shape=jax.ShapeDtypeStruct((n_pad, NPAD), jnp.float32),
        grid_spec=pltpu.PrefetchScalarGridSpec(
            num_scalar_prefetch=0,
            grid=(nt,),
            in_specs=[
                pl.BlockSpec((B_TILE, KPAD, HW), lambda i: (i, 0, 0)),   # batch tile
                pl.BlockSpec((c_out, KPAD), lambda i: (0, 0)),           # conv weight
                pl.BlockSpec((c_out * HW, NPAD), lambda i: (0, 0)),      # fc weight
                pl.BlockSpec((1, NPAD), lambda i: (0, 0)),               # fc bias
            ],
            out_specs=pl.BlockSpec((B_TILE, NPAD), lambda i: (i, 0)),
        ),
        compiler_params=pltpu.CompilerParams(
            dimension_semantics=("parallel",),   # batch-tile axis -> both v7x TCs
        ),
    )(patches, prepared["wct"], prepared["fcw"], prepared["fcb"])
    return out[:n, :N_CLASSES]


def ewc_regularization(importance_flat, p_flat, q_flat, *, tile_rows=2048):
    """EWC.compute_regularization on flattened params.

    Streams the 128-aligned prefix directly (no full pad/copy of the operands),
    masks the partial last tile in-kernel, and handles the <128-element tail
    with a tiny wrapper-side sum.
    """
    n = int(p_flat.shape[0])
    k = importance_flat.astype(jnp.float32)
    p = p_flat.astype(jnp.float32)
    q = q_flat.astype(jnp.float32)

    tile_rows = max(8, (tile_rows // 8) * 8)
    rows = n // LANE                         # full 128-wide rows handled in-kernel
    n_main = rows * LANE
    total = jnp.zeros((), jnp.float32)

    if rows > 0:
        rows8 = ((rows + 7) // 8) * 8
        tile_rows_eff = min(tile_rows, rows8)              # multiple of 8
        num_tiles = pl.cdiv(rows, tile_rows_eff)
        # Split across both v7x TensorCores when it divides evenly; serial
        # (and free) on single-TC chips.
        n_outer = 2 if (num_tiles >= 2 and num_tiles % 2 == 0) else 1
        tiles_per_core = num_tiles // n_outer

        def as2d(v):
            vm = v if n_main == n else v[:n_main]
            return vm.reshape(rows, LANE)

        def in_index_map(o, i):
            return (o * tiles_per_core + i, 0)

        partials = pl.pallas_call(
            functools.partial(_ewc_reg_kernel,
                              rows_valid=rows,
                              tiles_per_core=tiles_per_core),
            out_shape=jax.ShapeDtypeStruct((n_outer, 8, LANE), jnp.float32),
            grid_spec=pltpu.PrefetchScalarGridSpec(
                num_scalar_prefetch=0,
                grid=(n_outer, tiles_per_core),
                in_specs=[pl.BlockSpec((tile_rows_eff, LANE), in_index_map)] * 3,
                out_specs=pl.BlockSpec((1, 8, LANE), lambda o, i: (o, 0, 0)),
            ),
            compiler_params=pltpu.CompilerParams(
                dimension_semantics=("parallel", "arbitrary"),
                vmem_limit_bytes=32 * 1024 * 1024,   # ~7 MiB live; v7x-safe
            ),
        )(as2d(k), as2d(p), as2d(q))
        total = total + jnp.sum(partials)

    if n_main < n:                           # <128-element tail, trivial wrapper sum
        kt, pt, qt = k[n_main:], p[n_main:], q[n_main:]
        total = total + jnp.sum(kt * (pt - qt) ** 2)
    return total


# ---------------------------------------------------------------------------
# Parameter setup & pure-JAX references
# ---------------------------------------------------------------------------
def init_params(key, c_in=C_IN, c_out=C_OUT, h=H, w=W, n_classes=N_CLASSES):
    k1, k2, k3, k4 = jax.random.split(key, 4)
    feat = c_out * h * w
    return {
        "conv_w": jax.random.normal(k1, (c_out, c_in, 3, 3), jnp.float32) * 0.1,
        "conv_b": jax.random.normal(k2, (c_out,), jnp.float32) * 0.1,
        "fc_w": jax.random.normal(k3, (feat, n_classes), jnp.float32) * 0.02,
        "fc_b": jax.random.normal(k4, (n_classes,), jnp.float32) * 0.02,
    }


def flatten_params(params):
    return jnp.concatenate([params["conv_w"].ravel(), params["conv_b"].ravel(),
                            params["fc_w"].ravel(), params["fc_b"].ravel()])


def ref_forward(params, x):
    y = lax.conv_general_dilated(
        x, params["conv_w"], window_strides=(1, 1), padding="SAME",
        dimension_numbers=("NCHW", "OIHW", "NCHW"))
    y = y + params["conv_b"][None, :, None, None]
    y = jnp.maximum(y, 0.0)
    feat = y.reshape(x.shape[0], -1)             # PyTorch .view(N, -1) of NCHW
    return feat @ params["fc_w"] + params["fc_b"]


def ref_regularization(k, p, q):
    return jnp.sum(k * (p - q) ** 2)


# TODO(synk): update_Fisher (autograd Fisher accumulation over a DataLoader) and
# the loss/optimizer training plumbing have no standalone Pallas equivalent.

if __name__ == "__main__":
    key = jax.random.PRNGKey(0)
    kx, kp, kq, kimp, kbig = jax.random.split(key, 5)

    # Deterministic small inputs: batch=2, channels=4, spatial=16x16 (NCHW).
    x = jax.random.normal(kx, (2, C_IN, H, W), jnp.float32)
    params = init_params(kp)

    # --- forward pass (EWC.forward) ---
    prepared = prepare_forward_weights(params)   # hoisted once, not per call
    fwd = jax.jit(ewc_forward)
    logits = jax.block_until_ready(fwd(prepared, x))
    logits_ref = ref_forward(params, x)
    np.testing.assert_allclose(np.asarray(logits), np.asarray(logits_ref),
                               rtol=1e-4, atol=1e-4)

    # --- compute_regularization (EWC-specific reduction) ---
    # EWC.__init__ sets importance = zeros_like(model); use synthetic nonzero
    # importance and a perturbed "origin" to exercise the kernel (incl. the
    # unaligned-tail path, n = 20786).
    p_flat = flatten_params(params)
    q_flat = p_flat + 0.01 * jax.random.normal(kq, p_flat.shape, jnp.float32)
    importance = jax.random.uniform(kimp, p_flat.shape, jnp.float32)
    reg = jax.block_until_ready(jax.jit(ewc_regularization)(importance, p_flat, q_flat))
    reg_ref = ref_regularization(importance, p_flat, q_flat)
    np.testing.assert_allclose(float(reg), float(reg_ref), rtol=1e-4, atol=1e-5)

    # Second reg case: 128-aligned length with an even tile count, exercising
    # the multi-tile accumulation and the dual-TensorCore ("parallel") split.
    n_big = 2 * 1024 * 128
    kb1, kb2, kb3 = jax.random.split(kbig, 3)
    pb = jax.random.normal(kb1, (n_big,), jnp.float32)
    qb = pb + 0.01 * jax.random.normal(kb2, (n_big,), jnp.float32)
    ib = jax.random.uniform(kb3, (n_big,), jnp.float32)
    reg_big_fn = jax.jit(functools.partial(ewc_regularization, tile_rows=1024))
    reg_big = jax.block_until_ready(reg_big_fn(ib, pb, qb))
    reg_big_ref = ref_regularization(ib, pb, qb)
    np.testing.assert_allclose(float(reg_big), float(reg_big_ref),
                               rtol=1e-4, atol=1e-4)

    print("KERNEL_OK")
</pallas_src>

<mosaic_0001>
module attributes {stable_mosaic.version = 11 : i64} {
  func.func @_fused_forward_kernel(%arg0: i32, %arg1: memref<8x40x256xf32, #tpu.memory_space<vmem>>, %arg2: memref<8x40xf32, #tpu.memory_space<vmem>>, %arg3: memref<2048x128xf32, #tpu.memory_space<vmem>>, %arg4: memref<1x128xf32, #tpu.memory_space<vmem>>, %arg5: memref<8x128xf32, #tpu.memory_space<vmem>>) attributes {dimension_semantics = [#tpu.dimension_semantics<parallel>], iteration_bounds = array<i64: 1>, scalar_prefetch = 0 : i64, scratch_operands = 0 : i64, tpu.core_type = #tpu.core_type<tc>, window_params = [{transform_indices = @transform_0, window_bounds = array<i64: 8, 40, 256>}, {pipeline_mode = #tpu.pipeline_mode<synchronous>, transform_indices = @transform_1, window_bounds = array<i64: 8, 40>}, {pipeline_mode = #tpu.pipeline_mode<synchronous>, transform_indices = @transform_2, window_bounds = array<i64: 2048, 128>}, {pipeline_mode = #tpu.pipeline_mode<synchronous>, transform_indices = @transform_3, window_bounds = array<i64: 1, 128>}, {transform_indices = @transform_4, window_bounds = array<i64: 8, 128>}]} {
    %c0 = arith.constant 0 : index
    %c0_0 = arith.constant 0 : index
    %0 = vector.load %arg2[%c0, %c0_0] : memref<8x40xf32, #tpu.memory_space<vmem>>, vector<8x40xf32>
    %c0_1 = arith.constant 0 : index
    %c0_2 = arith.constant 0 : index
    %c0_3 = arith.constant 0 : index
    %1 = vector.load %arg1[%c0_1, %c0_2, %c0_3] : memref<8x40x256xf32, #tpu.memory_space<vmem>>, vector<1x40x256xf32>
    %2 = vector.shape_cast %1 : vector<1x40x256xf32> to vector<40x256xf32>
    %cst = arith.constant dense<0.000000e+00> : vector<8x256xf32>
    %3 = tpu.matmul %0, %2, %cst {dimension_numbers = #tpu.dot_dimension_numbers<[1], [0], [0], [1], [0, 0, 1, 1], [], []>} : vector<8x40xf32>, vector<40x256xf32>, vector<8x256xf32> -> vector<8x256xf32>
    %cst_4 = arith.constant 0.000000e+00 : f32
    %4 = vector.broadcast %cst_4 : f32 to vector<8x256xf32>
    %5 = arith.maximumf %3, %4 : vector<8x256xf32>
    %6 = vector.extract_strided_slice %5 {offsets = [0, 0], sizes = [1, 256], strides = [1, 1]} : vector<8x256xf32> to vector<1x256xf32>
    %7 = vector.extract_strided_slice %5 {offsets = [1, 0], sizes = [1, 256], strides = [1, 1]} : vector<8x256xf32> to vector<1x256xf32>
    %8 = vector.extract_strided_slice %5 {offsets = [2, 0], sizes = [1, 256], strides = [1, 1]} : vector<8x256xf32> to vector<1x256xf32>
    %9 = vector.extract_strided_slice %5 {offsets = [3, 0], sizes = [1, 256], strides = [1, 1]} : vector<8x256xf32> to vector<1x256xf32>
    %10 = vector.extract_strided_slice %5 {offsets = [4, 0], sizes = [1, 256], strides = [1, 1]} : vector<8x256xf32> to vector<1x256xf32>
    %11 = vector.extract_strided_slice %5 {offsets = [5, 0], sizes = [1, 256], strides = [1, 1]} : vector<8x256xf32> to vector<1x256xf32>
    %12 = vector.extract_strided_slice %5 {offsets = [6, 0], sizes = [1, 256], strides = [1, 1]} : vector<8x256xf32> to vector<1x256xf32>
    %13 = vector.extract_strided_slice %5 {offsets = [7, 0], sizes = [1, 256], strides = [1, 1]} : vector<8x256xf32> to vector<1x256xf32>
    %14 = tpu.concatenate %6, %7, %8, %9, %10, %11, %12, %13 in 1 : vector<1x256xf32>, vector<1x256xf32>, vector<1x256xf32>, vector<1x256xf32>, vector<1x256xf32>, vector<1x256xf32>, vector<1x256xf32>, vector<1x256xf32> -> vector<1x2048xf32>
    %c0_5 = arith.constant 0 : index
    %c0_6 = arith.constant 0 : index
    %15 = vector.load %arg2[%c0_5, %c0_6] : memref<8x40xf32, #tpu.memory_space<vmem>>, vector<8x40xf32>
    %c1 = arith.constant 1 : index
    %c0_7 = arith.constant 0 : index
    %c0_8 = arith.constant 0 : index
    %16 = vector.load %arg1[%c1, %c0_7, %c0_8] : memref<8x40x256xf32, #tpu.memory_space<vmem>>, vector<1x40x256xf32>
    %17 = vector.shape_cast %16 : vector<1x40x256xf32> to vector<40x256xf32>
    %cst_9 = arith.constant dense<0.000000e+00> : vector<8x256xf32>
    %18 = tpu.matmul %15, %17, %cst_9 {dimension_numbers = #tpu.dot_dimension_numbers<[1], [0], [0], [1], [0, 0, 1, 1], [], []>} : vector<8x40xf32>, vector<40x256xf32>, vector<8x256xf32> -> vector<8x256xf32>
    %cst_10 = arith.constant 0.000000e+00 : f32
    %19 = vector.broadcast %cst_10 : f32 to vector<8x256xf32>
    %20 = arith.maximumf %18, %19 : vector<8x256xf32>
    %21 = vector.extract_strided_slice %20 {offsets = [0, 0], sizes = [1, 256], strides = [1, 1]} : vector<8x256xf32> to vector<1x256xf32>
    %22 = vector.extract_strided_slice %20 {offsets = [1, 0], sizes = [1, 256], strides = [1, 1]} : vector<8x256xf32> to vector<1x256xf32>
    %23 = vector.extract_strided_slice %20 {offsets = [2, 0], sizes = [1, 256], strides = [1, 1]} : vector<8x256xf32> to vector<1x256xf32>
    %24 = vector.extract_strided_slice %20 {offsets = [3, 0], sizes = [1, 256], strides = [1, 1]} : vector<8x256xf32> to vector<1x256xf32>
    %25 = vector.extract_strided_slice %20 {offsets = [4, 0], sizes = [1, 256], strides = [1, 1]} : vector<8x256xf32> to vector<1x256xf32>
    %26 = vector.extract_strided_slice %20 {offsets = [5, 0], sizes = [1, 256], strides = [1, 1]} : vector<8x256xf32> to vector<1x256xf32>
    %27 = vector.extract_strided_slice %20 {offsets = [6, 0], sizes = [1, 256], strides = [1, 1]} : vector<8x256xf32> to vector<1x256xf32>
    %28 = vector.extract_strided_slice %20 {offsets = [7, 0], sizes = [1, 256], strides = [1, 1]} : vector<8x256xf32> to vector<1x256xf32>
    %29 = tpu.concatenate %21, %22, %23, %24, %25, %26, %27, %28 in 1 : vector<1x256xf32>, vector<1x256xf32>, vector<1x256xf32>, vector<1x256xf32>, vector<1x256xf32>, vector<1x256xf32>, vector<1x256xf32>, vector<1x256xf32> -> vector<1x2048xf32>
    %c0_11 = arith.constant 0 : index
    %c0_12 = arith.constant 0 : index
    %30 = vector.load %arg2[%c0_11, %c0_12] : memref<8x40xf32, #tpu.memory_space<vmem>>, vector<8x40xf32>
    %c2 = arith.constant 2 : index
    %c0_13 = arith.constant 0 : index
    %c0_14 = arith.constant 0 : index
    %31 = vector.load %arg1[%c2, %c0_13, %c0_14] : memref<8x40x256xf32, #tpu.memory_space<vmem>>, vector<1x40x256xf32>
    %32 = vector.shape_cast %31 : vector<1x40x256xf32> to vector<40x256xf32>
    %cst_15 = arith.constant dense<0.000000e+00> : vector<8x256xf32>
    %33 = tpu.matmul %30, %32, %cst_15 {dimension_numbers = #tpu.dot_dimension_numbers<[1], [0], [0], [1], [0, 0, 1, 1], [], []>} : vector<8x40xf32>, vector<40x256xf32>, vector<8x256xf32> -> vector<8x256xf32>
    %cst_16 = arith.constant 0.000000e+00 : f32
    %34 = vector.broadcast %cst_16 : f32 to vector<8x256xf32>
    %35 = arith.maximumf %33, %34 : vector<8x256xf32>
    %36 = vector.extract_strided_slice %35 {offsets = [0, 0], sizes = [1, 256], strides = [1, 1]} : vector<8x256xf32> to vector<1x256xf32>
    %37 = vector.extract_strided_slice %35 {offsets = [1, 0], sizes = [1, 256], strides = [1, 1]} : vector<8x256xf32> to vector<1x256xf32>
    %38 = vector.extract_strided_slice %35 {offsets = [2, 0], sizes = [1, 256], strides = [1, 1]} : vector<8x256xf32> to vector<1x256xf32>
    %39 = vector.extract_strided_slice %35 {offsets = [3, 0], sizes = [1, 256], strides = [1, 1]} : vector<8x256xf32> to vector<1x256xf32>
    %40 = vector.extract_strided_slice %35 {offsets = [4, 0], sizes = [1, 256], strides = [1, 1]} : vector<8x256xf32> to vector<1x256xf32>
    %41 = vector.extract_strided_slice %35 {offsets = [5, 0], sizes = [1, 256], strides = [1, 1]} : vector<8x256xf32> to vector<1x256xf32>
    %42 = vector.extract_strided_slice %35 {offsets = [6, 0], sizes = [1, 256], strides = [1, 1]} : vector<8x256xf32> to vector<1x256xf32>
    %43 = vector.extract_strided_slice %35 {offsets = [7, 0], sizes = [1, 256], strides = [1, 1]} : vector<8x256xf32> to vector<1x256xf32>
    %44 = tpu.concatenate %36, %37, %38, %39, %40, %41, %42, %43 in 1 : vector<1x256xf32>, vector<1x256xf32>, vector<1x256xf32>, vector<1x256xf32>, vector<1x256xf32>, vector<1x256xf32>, vector<1x256xf32>, vector<1x256xf32> -> vector<1x2048xf32>
    %c0_17 = arith.constant 0 : index
    %c0_18 = arith.constant 0 : index
    %45 = vector.load %arg2[%c0_17, %c0_18] : memref<8x40xf32, #tpu.memory_space<vmem>>, vector<8x40xf32>
    %c3 = arith.constant 3 : index
    %c0_19 = arith.constant 0 : index
    %c0_20 = arith.constant 0 : index
    %46 = vector.load %arg1[%c3, %c0_19, %c0_20] : memref<8x40x256xf32, #tpu.memory_space<vmem>>, vector<1x40x256xf32>
    %47 = vector.shape_cast %46 : vector<1x40x256xf32> to vector<40x256xf32>
    %cst_21 = arith.constant dense<0.000000e+00> : vector<8x256xf32>
    %48 = tpu.matmul %45, %47, %cst_21 {dimension_numbers = #tpu.dot_dimension_numbers<[1], [0], [0], [1], [0, 0, 1, 1], [], []>} : vector<8x40xf32>, vector<40x256xf32>, vector<8x256xf32> -> vector<8x256xf32>
    %cst_22 = arith.constant 0.000000e+00 : f32
    %49 = vector.broadcast %cst_22 : f32 to vector<8x256xf32>
    %50 = arith.maximumf %48, %49 : vector<8x256xf32>
    %51 = vector.extract_strided_slice %50 {offsets = [0, 0], sizes = [1, 256], strides = [1, 1]} : vector<8x256xf32> to vector<1x256xf32>
    %52 = vector.extract_strided_slice %50 {offsets = [1, 0], sizes = [1, 256], strides = [1, 1]} : vector<8x256xf32> to vector<1x256xf32>
    %53 = vector.extract_strided_slice %50 {offsets = [2, 0], sizes = [1, 256], strides = [1, 1]} : vector<8x256xf32> to vector<1x256xf32>
    %54 = vector.extract_strided_slice %50 {offsets = [3, 0], sizes = [1, 256], strides = [1, 1]} : vector<8x256xf32> to vector<1x256xf32>
    %55 = vector.extract_strided_slice %50 {offsets = [4, 0], sizes = [1, 256], strides = [1, 1]} : vector<8x256xf32> to vector<1x256xf32>
    %56 = vector.extract_strided_slice %50 {offsets = [5, 0], sizes = [1, 256], strides = [1, 1]} : vector<8x256xf32> to vector<1x256xf32>
    %57 = vector.extract_strided_slice %50 {offsets = [6, 0], sizes = [1, 256], strides = [1, 1]} : vector<8x256xf32> to vector<1x256xf32>
    %58 = vector.extract_strided_slice %50 {offsets = [7, 0], sizes = [1, 256], strides = [1, 1]} : vector<8x256xf32> to vector<1x256xf32>
    %59 = tpu.concatenate %51, %52, %53, %54, %55, %56, %57, %58 in 1 : vector<1x256xf32>, vector<1x256xf32>, vector<1x256xf32>, vector<1x256xf32>, vector<1x256xf32>, vector<1x256xf32>, vector<1x256xf32>, vector<1x256xf32> -> vector<1x2048xf32>
    %c0_23 = arith.constant 0 : index
    %c0_24 = arith.constant 0 : index
    %60 = vector.load %arg2[%c0_23, %c0_24] : memref<8x40xf32, #tpu.memory_space<vmem>>, vector<8x40xf32>
    %c4 = arith.constant 4 : index
    %c0_25 = arith.constant 0 : index
    %c0_26 = arith.constant 0 : index
    %61 = vector.load %arg1[%c4, %c0_25, %c0_26] : memref<8x40x256xf32, #tpu.memory_space<vmem>>, vector<1x40x256xf32>
    %62 = vector.shape_cast %61 : vector<1x40x256xf32> to vector<40x256xf32>
    %cst_27 = arith.constant dense<0.000000e+00> : vector<8x256xf32>
    %63 = tpu.matmul %60, %62, %cst_27 {dimension_numbers = #tpu.dot_dimension_numbers<[1], [0], [0], [1], [0, 0, 1, 1], [], []>} : vector<8x40xf32>, vector<40x256xf32>, vector<8x256xf32> -> vector<8x256xf32>
    %cst_28 = arith.constant 0.000000e+00 : f32
    %64 = vector.broadcast %cst_28 : f32 to vector<8x256xf32>
    %65 = arith.maximumf %63, %64 : vector<8x256xf32>
    %66 = vector.extract_strided_slice %65 {offsets = [0, 0], sizes = [1, 256], strides = [1, 1]} : vector<8x256xf32> to vector<1x256xf32>
    %67 = vector.extract_strided_slice %65 {offsets = [1, 0], sizes = [1, 256], strides = [1, 1]} : vector<8x256xf32> to vector<1x256xf32>
    %68 = vector.extract_strided_slice %65 {offsets = [2, 0], sizes = [1, 256], strides = [1, 1]} : vector<8x256xf32> to vector<1x256xf32>
    %69 = vector.extract_strided_slice %65 {offsets = [3, 0], sizes = [1, 256], strides = [1, 1]} : vector<8x256xf32> to vector<1x256xf32>
    %70 = vector.extract_strided_slice %65 {offsets = [4, 0], sizes = [1, 256], strides = [1, 1]} : vector<8x256xf32> to vector<1x256xf32>
    %71 = vector.extract_strided_slice %65 {offsets = [5, 0], sizes = [1, 256], strides = [1, 1]} : vector<8x256xf32> to vector<1x256xf32>
    %72 = vector.extract_strided_slice %65 {offsets = [6, 0], sizes = [1, 256], strides = [1, 1]} : vector<8x256xf32> to vector<1x256xf32>
    %73 = vector.extract_strided_slice %65 {offsets = [7, 0], sizes = [1, 256], strides = [1, 1]} : vector<8x256xf32> to vector<1x256xf32>
    %74 = tpu.concatenate %66, %67, %68, %69, %70, %71, %72, %73 in 1 : vector<1x256xf32>, vector<1x256xf32>, vector<1x256xf32>, vector<1x256xf32>, vector<1x256xf32>, vector<1x256xf32>, vector<1x256xf32>, vector<1x256xf32> -> vector<1x2048xf32>
    %c0_29 = arith.constant 0 : index
    %c0_30 = arith.constant 0 : index
    %75 = vector.load %arg2[%c0_29, %c0_30] : memref<8x40xf32, #tpu.memory_space<vmem>>, vector<8x40xf32>
    %c5 = arith.constant 5 : index
    %c0_31 = arith.constant 0 : index
    %c0_32 = arith.constant 0 : index
    %76 = vector.load %arg1[%c5, %c0_31, %c0_32] : memref<8x40x256xf32, #tpu.memory_space<vmem>>, vector<1x40x256xf32>
    %77 = vector.shape_cast %76 : vector<1x40x256xf32> to vector<40x256xf32>
    %cst_33 = arith.constant dense<0.000000e+00> : vector<8x256xf32>
    %78 = tpu.matmul %75, %77, %cst_33 {dimension_numbers = #tpu.dot_dimension_numbers<[1], [0], [0], [1], [0, 0, 1, 1], [], []>} : vector<8x40xf32>, vector<40x256xf32>, vector<8x256xf32> -> vector<8x256xf32>
    %cst_34 = arith.constant 0.000000e+00 : f32
    %79 = vector.broadcast %cst_34 : f32 to vector<8x256xf32>
    %80 = arith.maximumf %78, %79 : vector<8x256xf32>
    %81 = vector.extract_strided_slice %80 {offsets = [0, 0], sizes = [1, 256], strides = [1, 1]} : vector<8x256xf32> to vector<1x256xf32>
    %82 = vector.extract_strided_slice %80 {offsets = [1, 0], sizes = [1, 256], strides = [1, 1]} : vector<8x256xf32> to vector<1x256xf32>
    %83 = vector.extract_strided_slice %80 {offsets = [2, 0], sizes = [1, 256], strides = [1, 1]} : vector<8x256xf32> to vector<1x256xf32>
    %84 = vector.extract_strided_slice %80 {offsets = [3, 0], sizes = [1, 256], strides = [1, 1]} : vector<8x256xf32> to vector<1x256xf32>
    %85 = vector.extract_strided_slice %80 {offsets = [4, 0], sizes = [1, 256], strides = [1, 1]} : vector<8x256xf32> to vector<1x256xf32>
    %86 = vector.extract_strided_slice %80 {offsets = [5, 0], sizes = [1, 256], strides = [1, 1]} : vector<8x256xf32> to vector<1x256xf32>
    %87 = vector.extract_strided_slice %80 {offsets = [6, 0], sizes = [1, 256], strides = [1, 1]} : vector<8x256xf32> to vector<1x256xf32>
    %88 = vector.extract_strided_slice %80 {offsets = [7, 0], sizes = [1, 256], strides = [1, 1]} : vector<8x256xf32> to vector<1x256xf32>
    %89 = tpu.concatenate %81, %82, %83, %84, %85, %86, %87, %88 in 1 : vector<1x256xf32>, vector<1x256xf32>, vector<1x256xf32>, vector<1x256xf32>, vector<1x256xf32>, vector<1x256xf32>, vector<1x256xf32>, vector<1x256xf32> -> vector<1x2048xf32>
    %c0_35 = arith.constant 0 : index
    %c0_36 = arith.constant 0 : index
    %90 = vector.load %arg2[%c0_35, %c0_36] : memref<8x40xf32, #tpu.memory_space<vmem>>, vector<8x40xf32>
    %c6 = arith.constant 6 : index
    %c0_37 = arith.constant 0 : index
    %c0_38 = arith.constant 0 : index
    %91 = vector.load %arg1[%c6, %c0_37, %c0_38] : memref<8x40x256xf32, #tpu.memory_space<vmem>>, vector<1x40x256xf32>
    %92 = vector.shape_cast %91 : vector<1x40x256xf32> to vector<40x256xf32>
    %cst_39 = arith.constant dense<0.000000e+00> : vector<8x256xf32>
    %93 = tpu.matmul %90, %92, %cst_39 {dimension_numbers = #tpu.dot_dimension_numbers<[1], [0], [0], [1], [0, 0, 1, 1], [], []>} : vector<8x40xf32>, vector<40x256xf32>, vector<8x256xf32> -> vector<8x256xf32>
    %cst_40 = arith.constant 0.000000e+00 : f32
    %94 = vector.broadcast %cst_40 : f32 to vector<8x256xf32>
    %95 = arith.maximumf %93, %94 : vector<8x256xf32>
    %96 = vector.extract_strided_slice %95 {offsets = [0, 0], sizes = [1, 256], strides = [1, 1]} : vector<8x256xf32> to vector<1x256xf32>
    %97 = vector.extract_strided_slice %95 {offsets = [1, 0], sizes = [1, 256], strides = [1, 1]} : vector<8x256xf32> to vector<1x256xf32>
    %98 = vector.extract_strided_slice %95 {offsets = [2, 0], sizes = [1, 256], strides = [1, 1]} : vector<8x256xf32> to vector<1x256xf32>
    %99 = vector.extract_strided_slice %95 {offsets = [3, 0], sizes = [1, 256], strides = [1, 1]} : vector<8x256xf32> to vector<1x256xf32>
    %100 = vector.extract_strided_slice %95 {offsets = [4, 0], sizes = [1, 256], strides = [1, 1]} : vector<8x256xf32> to vector<1x256xf32>
    %101 = vector.extract_strided_slice %95 {offsets = [5, 0], sizes = [1, 256], strides = [1, 1]} : vector<8x256xf32> to vector<1x256xf32>
    %102 = vector.extract_strided_slice %95 {offsets = [6, 0], sizes = [1, 256], strides = [1, 1]} : vector<8x256xf32> to vector<1x256xf32>
    %103 = vector.extract_strided_slice %95 {offsets = [7, 0], sizes = [1, 256], strides = [1, 1]} : vector<8x256xf32> to vector<1x256xf32>
    %104 = tpu.concatenate %96, %97, %98, %99, %100, %101, %102, %103 in 1 : vector<1x256xf32>, vector<1x256xf32>, vector<1x256xf32>, vector<1x256xf32>, vector<1x256xf32>, vector<1x256xf32>, vector<1x256xf32>, vector<1x256xf32> -> vector<1x2048xf32>
    %c0_41 = arith.constant 0 : index
    %c0_42 = arith.constant 0 : index
    %105 = vector.load %arg2[%c0_41, %c0_42] : memref<8x40xf32, #tpu.memory_space<vmem>>, vector<8x40xf32>
    %c7 = arith.constant 7 : index
    %c0_43 = arith.constant 0 : index
    %c0_44 = arith.constant 0 : index
    %106 = vector.load %arg1[%c7, %c0_43, %c0_44] : memref<8x40x256xf32, #tpu.memory_space<vmem>>, vector<1x40x256xf32>
    %107 = vector.shape_cast %106 : vector<1x40x256xf32> to vector<40x256xf32>
    %cst_45 = arith.constant dense<0.000000e+00> : vector<8x256xf32>
    %108 = tpu.matmul %105, %107, %cst_45 {dimension_numbers = #tpu.dot_dimension_numbers<[1], [0], [0], [1], [0, 0, 1, 1], [], []>} : vector<8x40xf32>, vector<40x256xf32>, vector<8x256xf32> -> vector<8x256xf32>
    %cst_46 = arith.constant 0.000000e+00 : f32
    %109 = vector.broadcast %cst_46 : f32 to vector<8x256xf32>
    %110 = arith.maximumf %108, %109 : vector<8x256xf32>
    %111 = vector.extract_strided_slice %110 {offsets = [0, 0], sizes = [1, 256], strides = [1, 1]} : vector<8x256xf32> to vector<1x256xf32>
    %112 = vector.extract_strided_slice %110 {offsets = [1, 0], sizes = [1, 256], strides = [1, 1]} : vector<8x256xf32> to vector<1x256xf32>
    %113 = vector.extract_strided_slice %110 {offsets = [2, 0], sizes = [1, 256], strides = [1, 1]} : vector<8x256xf32> to vector<1x256xf32>
    %114 = vector.extract_strided_slice %110 {offsets = [3, 0], sizes = [1, 256], strides = [1, 1]} : vector<8x256xf32> to vector<1x256xf32>
    %115 = vector.extract_strided_slice %110 {offsets = [4, 0], sizes = [1, 256], strides = [1, 1]} : vector<8x256xf32> to vector<1x256xf32>
    %116 = vector.extract_strided_slice %110 {offsets = [5, 0], sizes = [1, 256], strides = [1, 1]} : vector<8x256xf32> to vector<1x256xf32>
    %117 = vector.extract_strided_slice %110 {offsets = [6, 0], sizes = [1, 256], strides = [1, 1]} : vector<8x256xf32> to vector<1x256xf32>
    %118 = vector.extract_strided_slice %110 {offsets = [7, 0], sizes = [1, 256], strides = [1, 1]} : vector<8x256xf32> to vector<1x256xf32>
    %119 = tpu.concatenate %111, %112, %113, %114, %115, %116, %117, %118 in 1 : vector<1x256xf32>, vector<1x256xf32>, vector<1x256xf32>, vector<1x256xf32>, vector<1x256xf32>, vector<1x256xf32>, vector<1x256xf32>, vector<1x256xf32> -> vector<1x2048xf32>
    %120 = tpu.concatenate %14, %29, %44, %59, %74, %89, %104, %119 in 0 : vector<1x2048xf32>, vector<1x2048xf32>, vector<1x2048xf32>, vector<1x2048xf32>, vector<1x2048xf32>, vector<1x2048xf32>, vector<1x2048xf32>, vector<1x2048xf32> -> vector<8x2048xf32>
    %c0_47 = arith.constant 0 : index
    %c0_48 = arith.constant 0 : index
    %121 = vector.load %arg3[%c0_47, %c0_48] : memref<2048x128xf32, #tpu.memory_space<vmem>>, vector<2048x128xf32>
    %cst_49 = arith.constant dense<0.000000e+00> : vector<8x128xf32>
    %122 = tpu.matmul %120, %121, %cst_49 {dimension_numbers = #tpu.dot_dimension_numbers<[1], [0], [0], [1], [0, 0, 1, 1], [], []>} : vector<8x2048xf32>, vector<2048x128xf32>, vector<8x128xf32> -> vector<8x128xf32>
    %c0_50 = arith.constant 0 : index
    %c0_51 = arith.constant 0 : index
    %123 = vector.load %arg4[%c0_50, %c0_51] : memref<1x128xf32, #tpu.memory_space<vmem>>, vector<1x128xf32>
    %124 = vector.broadcast %123 : vector<1x128xf32> to vector<8x128xf32>
    %125 = arith.addf %122, %124 : vector<8x128xf32>
    %c0_52 = arith.constant 0 : index
    %c0_53 = arith.constant 0 : index
    %126 = vector.load %arg5[%c0_52, %c0_53] : memref<8x128xf32, #tpu.memory_space<vmem>>, vector<8x128xf32>
    tpu.vector_store %arg5[%c0_52, %c0_53], %125 {strides = array<i32>} : memref<8x128xf32, #tpu.memory_space<vmem>>, vector<8x128xf32>,
    return
  }
  func.func @transform_0(%arg0: i32) -> (i32, i32, i32) {
    %c0_i32 = arith.constant 0 : i32
    %c0_i32_0 = arith.constant 0 : i32
    %c0_i32_1 = arith.constant 0 : i32
    return %arg0, %c0_i32, %c0_i32_0 : i32, i32, i32
  }
  func.func @transform_1(%arg0: i32) -> (i32, i32) {
    %c0_i32 = arith.constant 0 : i32
    %c0_i32_0 = arith.constant 0 : i32
    %c0_i32_1 = arith.constant 0 : i32
    return %c0_i32, %c0_i32_0 : i32, i32
  }
  func.func @transform_2(%arg0: i32) -> (i32, i32) {
    %c0_i32 = arith.constant 0 : i32
    %c0_i32_0 = arith.constant 0 : i32
    %c0_i32_1 = arith.constant 0 : i32
    return %c0_i32, %c0_i32_0 : i32, i32
  }
  func.func @transform_3(%arg0: i32) -> (i32, i32) {
    %c0_i32 = arith.constant 0 : i32
    %c0_i32_0 = arith.constant 0 : i32
    %c0_i32_1 = arith.constant 0 : i32
    return %c0_i32, %c0_i32_0 : i32, i32
  }
  func.func @transform_4(%arg0: i32) -> (i32, i32) {
    %c0_i32 = arith.constant 0 : i32
    %c0_i32_0 = arith.constant 0 : i32
    return %arg0, %c0_i32 : i32, i32
  }
}

</mosaic_0001>

<bundles_post_ra>
// kernel: ewc_forward.1
= control target key start
LH: loop header
LB: loop body
LE: loop exit
PB: predicated region body
PF: predicated region fallthrough
CT: control target
= control target key end

     0   :  { %v2756_v3 = vmov 0.0   ;;  %vm28_vm0 = vcmask 326656   ;;  %vm1045_vm1 = vcmask 1040384   ;;  %vm1062_vm2 = vcmask 1041408   ;;  %s4309_s0 = inlined_call_operand.vmem [shape: f32[8,40,256], index: 0, kind: input, shape index: {}]   ;;  %s4310_s1 = inlined_call_operand.vmem [shape: f32[8,40], index: 1, kind: input, shape index: {}]   ;;  %s4311_s2 = inlined_call_operand.vmem [shape: f32[2048,128], index: 2, kind: input, shape index: {}]   ;;  %s4312_s3 = inlined_call_operand.vmem [shape: f32[1,128], index: 3, kind: input, shape index: {}]   ;;  %s4313_s4 = inlined_call_operand.vmem [shape: f32[8,128], index: 4, kind: output, shape index: {}]  }
   0x1   :  { %v19_v0 = vld [vmem:[%s4309_s0 + $0x8] sm:$0xff]  ;;  %v21_v1 = vld [vmem:[%s4309_s0 + $0x18] sm:$0xff]  ;;  %96 = vmatprep.mubr.f32.mxu0 %v2756_v3  ;;  %210 = vmatprep.mubr.f32.mxu1 %v2756_v3  ;;  %v18_v6 = vld [vmem:[%s4309_s0] sm:$0xff]  ;;  %vm1079_vm3 = vcmask 1042432   ;;  %vm1096_vm4 = vcmask 1043456   ;;  %vm1113_vm5 = vcmask 1044480  }
   0x2   :  { %v1994_v2 = vld [vmem:[%s4309_s0 + $0x58] sm:$0xff]  ;;  %v2435_v4 = vpack.c.bf16 %v21_v1, %v19_v0  ;;  %v1996_v5 = vld [vmem:[%s4309_s0 + $0x68] sm:$0xff]  ;;  %v20_v7 = vld [vmem:[%s4309_s0 + $0x10] sm:$0xff]  ;;  %vm1147_vm6 = vcmask 1046528   ;;  %vm1130_vm7 = vcmask 1045504  }
   0x3   :  { %v2443_v8 = vpack.c.bf16 %v1996_v5, %v1994_v2  ;;  %v2437_v9 = vpack.c.bf16 %v20_v7, %v18_v6  ;;  %v1993_v10 = vld [vmem:[%s4309_s0 + $0x50] sm:$0xff]  ;;  %v1995_v11 = vld [vmem:[%s4309_s0 + $0x60] sm:$0xff]  ;;  %v23_v12 = vld [vmem:[%s4309_s0 + $0x28] sm:$0xff] }
   0x4   :  { %2436 = vmatprep.subr.bf16.mxu0 %v2435_v4  ;;  %v2445_v13 = vpack.c.bf16 %v1995_v11, %v1993_v10  ;;  %v25_v14 = vld [vmem:[%s4309_s0 + $0x38] sm:$0xff]  ;;  %v2000_v16 = vld [vmem:[%s4309_s0 + $0x88] sm:$0xff]  ;;  %v22_v19 = vld [vmem:[%s4309_s0 + $0x20] sm:$0xff] }
   0x5   :  { %v1998_v15 = vld [vmem:[%s4309_s0 + $0x78] sm:$0xff]  ;;  %2444 = vmatprep.subr.bf16.mxu1 %v2443_v8  ;;  %2438 = vmatpush1.bf16.msra.mxu0 %v2437_v9  ;;  %v2439_v17 = vpack.c.bf16 %v25_v14, %v23_v12  ;;  %v24_v20 = vld [vmem:[%s4309_s0 + $0x30] sm:$0xff]  ;;  %v1999_v23 = vld [vmem:[%s4309_s0 + $0x80] sm:$0xff] }
   0x6   :  { %v2447_v18 = vpack.c.bf16 %v2000_v16, %v1998_v15  ;;  %v1997_v21 = vld [vmem:[%s4309_s0 + $0x70] sm:$0xff]  ;;  %2446 = vmatpush1.bf16.msra.mxu1 %v2445_v13  ;;  %v2441_v22 = vpack.c.bf16 %v24_v20, %v22_v19  ;;  %v27_v25 = vld [vmem:[%s4309_s0 + $0x48] sm:$0xff]  ;;  %v2002_v26 = vld [vmem:[%s4309_s0 + $0x98] sm:$0xff] }
   0x7   :  { %2440 = vmatprep.subr.bf16.mxu0 %v2439_v17  ;;  %v2449_v24 = vpack.c.bf16 %v1999_v23, %v1997_v21  ;;  %v26_v27 = vld [vmem:[%s4309_s0 + $0x40] sm:$0xff]  ;;  %v2005_v28 = vld [vmem:[%s4309_s0 + $0xa8] sm:$0xff]  ;;  %v2007_v29 = vld [vmem:[%s4309_s0 + $0xb8] sm:$0xff] }
   0x8   :  { %2448 = vmatprep.subr.bf16.mxu1 %v2447_v18  ;;  %v2016_v30 = vld [vmem:[%s4309_s0 + $0xf8] sm:$0xff]  ;;  %v2001_v31 = vld [vmem:[%s4309_s0 + $0x90] sm:$0xff]  ;;  %v2856_v32 = vld [vmem:[%s4310_s1] sm:$0xff]  ;;  %v2451_v39 = vpack.c.bf16 %v2007_v29, %v2005_v28 }
   0x9   :  { %2442 = vmatpush1.bf16.msra.mxu0 %v2441_v22  ;;  %v2018_v33 = vld [vmem:[%s4309_s0 + $0x108] sm:$0xff]  ;;  %v2004_v34 = vld [vmem:[%s4309_s0 + $0xa0] sm:$0xff]  ;;  %v2006_v35 = vld [vmem:[%s4309_s0 + $0xb0] sm:$0xff] }
   0xa   :  { %2450 = vmatpush1.bf16.msra.mxu1 %v2449_v24  ;;  %40 = vmatprep.subr.mxu0 %v27_v25  ;;  %v2015_v36 = vld [vmem:[%s4309_s0 + $0xf0] sm:$0xff]  ;;  %v2017_v37 = vld [vmem:[%s4309_s0 + $0x100] sm:$0xff]  ;;  %v2009_v38 = vld [vmem:[%s4309_s0 + $0xc8] sm:$0xff]  ;;  %v2459_v43 = vpack.c.bf16 %v2018_v33, %v2016_v30  ;;  %v2453_v44 = vpack.c.bf16 %v2006_v35, %v2004_v34 }
   0xb   :  { %154 = vmatprep.subr.mxu1 %v2002_v26  ;;  %v2011_v40 = vld [vmem:[%s4309_s0 + $0xd8] sm:$0xff]  ;;  %v2022_v42 = vld [vmem:[%s4309_s0 + $0x128] sm:$0xff]  ;;  %v2461_v45 = vpack.c.bf16 %v2017_v37, %v2015_v36  ;;  %v2008_v47 = vld [vmem:[%s4309_s0 + $0xc0] sm:$0xff] }
   0xc   :  { %v2020_v41 = vld [vmem:[%s4309_s0 + $0x118] sm:$0xff]  ;;  %v2455_v46 = vpack.c.bf16 %v2011_v40, %v2009_v38  ;;  %v2010_v48 = vld [vmem:[%s4309_s0 + $0xd0] sm:$0xff]  ;;  %v2021_v51 = vld [vmem:[%s4309_s0 + $0x120] sm:$0xff] }
   0xd   :  { %41 = vmatpush1.msra.mxu0 %v26_v27  ;;  %v2463_v49 = vpack.c.bf16 %v2022_v42, %v2020_v41  ;;  %v2019_v50 = vld [vmem:[%s4309_s0 + $0x110] sm:$0xff]  ;;  %v2457_v52 = vpack.c.bf16 %v2010_v48, %v2008_v47  ;;  %v2013_v54 = vld [vmem:[%s4309_s0 + $0xe8] sm:$0xff]  ;;  %v2024_v55 = vld [vmem:[%s4309_s0 + $0x138] sm:$0xff] }
   0xe   :  { %155 = vmatpush1.msra.mxu1 %v2001_v31  ;;  %1992 = vmatmul.mubr.msk.f32.vlgmr.msra.gmra.mrb[0].mxu0 %vm28_vm0, %v2856_v32  ;;  %v2465_v53 = vpack.c.bf16 %v2021_v51, %v2019_v50  ;;  %v2027_v56 = vld [vmem:[%s4309_s0 + $0x148] sm:$0xff]  ;;  %v2012_v57 = vld [vmem:[%s4309_s0 + $0xe0] sm:$0xff]  ;;  %v2029_v58 = vld [vmem:[%s4309_s0 + $0x158] sm:$0xff] }
   0xf   :  { %2003 = vmatmul.mubr.msk.f32.vlgmr.msra.gmra.mrb[0].mxu1 %vm28_vm0, %v2856_v32  ;;  %2452 = vmatprep.subr.bf16.mxu0 %v2451_v39  ;;  %v2038_v59 = vld [vmem:[%s4309_s0 + $0x198] sm:$0xff]  ;;  %v2040_v60 = vld [vmem:[%s4309_s0 + $0x1a8] sm:$0xff]  ;;  %v2026_v61 = vld [vmem:[%s4309_s0 + $0x140] sm:$0xff]  ;;  %v2467_v5 = vpack.c.bf16 %v2029_v58, %v2027_v56 }
  0x10   :  { %2460 = vmatprep.subr.bf16.mxu1 %v2459_v43  ;;  %2454 = vmatpush1.bf16.msra.mxu0 %v2453_v44  ;;  %v2028_v62 = vld [vmem:[%s4309_s0 + $0x150] sm:$0xff]  ;;  %v2039_v0 = vld [vmem:[%s4309_s0 + $0x1a0] sm:$0xff]  ;;  %v2031_v1 = vld [vmem:[%s4309_s0 + $0x168] sm:$0xff]  ;;  %v2475_v8 = vpack.c.bf16 %v2040_v60, %v2038_v59 }
  0x11   :  { %2462 = vmatpush1.bf16.msra.mxu1 %v2461_v45  ;;  %2456 = vmatprep.subr.bf16.mxu0 %v2455_v46  ;;  %v2037_v63 = vld [vmem:[%s4309_s0 + $0x190] sm:$0xff]  ;;  %v2033_v2 = vld [vmem:[%s4309_s0 + $0x178] sm:$0xff]  ;;  %v2044_v7 = vld [vmem:[%s4309_s0 + $0x1c8] sm:$0xff]  ;;  %v2469_v9 = vpack.c.bf16 %v2028_v62, %v2026_v61 }
  0x12   :  { %2464 = vmatprep.subr.bf16.mxu1 %v2463_v49  ;;  %310 = vmatprep.mubr.f32.mxu0 %v2756_v3  ;;  %v2023_v4 = vld [vmem:[%s4309_s0 + $0x130] sm:$0xff]  ;;  %v2042_v6 = vld [vmem:[%s4309_s0 + $0x1b8] sm:$0xff]  ;;  %v2477_v10 = vpack.c.bf16 %v2039_v0, %v2037_v63  ;;  %v2471_v11 = vpack.c.bf16 %v2033_v2, %v2031_v1  ;;  %v2030_v12 = vld [vmem:[%s4309_s0 + $0x160] sm:$0xff] }
  0x13   :  { %410 = vmatprep.mubr.f32.mxu1 %v2756_v3  ;;  %v2032_v13 = vld [vmem:[%s4309_s0 + $0x170] sm:$0xff]  ;;  %v2479_v14 = vpack.c.bf16 %v2044_v7, %v2042_v6  ;;  %v2043_v16 = vld [vmem:[%s4309_s0 + $0x1c0] sm:$0xff]  ;;  %v2035_v19 = vld [vmem:[%s4309_s0 + $0x188] sm:$0xff] }
  0x14   :  { %2458 = vmatpush1.bf16.msra.mxu0 %v2457_v52  ;;  %v2041_v15 = vld [vmem:[%s4309_s0 + $0x1b0] sm:$0xff]  ;;  %v2473_v17 = vpack.c.bf16 %v2032_v13, %v2030_v12  ;;  %v2046_v20 = vld [vmem:[%s4309_s0 + $0x1d8] sm:$0xff]  ;;  %v2049_v21 = vld [vmem:[%s4309_s0 + $0x1e8] sm:$0xff] }
  0x15   :  { %2466 = vmatpush1.bf16.msra.mxu1 %v2465_v53  ;;  %254 = vmatprep.subr.mxu0 %v2013_v54  ;;  %v2481_v18 = vpack.c.bf16 %v2043_v16, %v2041_v15  ;;  %v2034_v22 = vld [vmem:[%s4309_s0 + $0x180] sm:$0xff]  ;;  %v2051_v23 = vld [vmem:[%s4309_s0 + $0x1f8] sm:$0xff]  ;;  %v2062_v25 = vld [vmem:[%s4309_s0 + $0x248] sm:$0xff] }
  0x16   :  { %354 = vmatprep.subr.mxu1 %v2024_v55  ;;  %v2060_v24 = vld [vmem:[%s4309_s0 + $0x238] sm:$0xff]  ;;  %v2048_v26 = vld [vmem:[%s4309_s0 + $0x1e0] sm:$0xff]  ;;  %v2050_v27 = vld [vmem:[%s4309_s0 + $0x1f0] sm:$0xff]  ;;  %v2483_v34 = vpack.c.bf16 %v2051_v23, %v2049_v21 }
  0x17   :  { %v2059_v28 = vld [vmem:[%s4309_s0 + $0x230] sm:$0xff]  ;;  %v2061_v29 = vld [vmem:[%s4309_s0 + $0x240] sm:$0xff]  ;;  %v2053_v30 = vld [vmem:[%s4309_s0 + $0x208] sm:$0xff]  ;;  %v2491_v37 = vpack.c.bf16 %v2062_v25, %v2060_v24  ;;  %v2485_v38 = vpack.c.bf16 %v2050_v27, %v2048_v26 }
  0x18   :  { %255 = vmatpush1.msra.mxu0 %v2012_v57  ;;  %v2055_v31 = vld [vmem:[%s4309_s0 + $0x218] sm:$0xff]  ;;  %v2045_v33 = vld [vmem:[%s4309_s0 + $0x1d0] sm:$0xff]  ;;  %v2066_v36 = vld [vmem:[%s4309_s0 + $0x268] sm:$0xff]  ;;  %v2493_v39 = vpack.c.bf16 %v2061_v29, %v2059_v28 }
  0x19   :  { %355 = vmatpush1.msra.mxu1 %v2023_v4  ;;  %2014 = vmatmul.mubr.msk.f32.vlgmr.msra.gmra.mrb[2].mxu0 %vm28_vm0, %v2856_v32  ;;  %v2064_v35 = vld [vmem:[%s4309_s0 + $0x258] sm:$0xff]  ;;  %v2487_v40 = vpack.c.bf16 %v2055_v31, %v2053_v30  ;;  %v2052_v41 = vld [vmem:[%s4309_s0 + $0x200] sm:$0xff]  ;;  %v2054_v42 = vld [vmem:[%s4309_s0 + $0x210] sm:$0xff] }
  0x1a   :  { %2025 = vmatmul.mubr.msk.f32.vlgmr.msra.gmra.mrb[2].mxu1 %vm28_vm0, %v2856_v32  ;;  %2468 = vmatprep.subr.bf16.mxu0 %v2467_v5  ;;  %v2495_v43 = vpack.c.bf16 %v2066_v36, %v2064_v35  ;;  %v2063_v44 = vld [vmem:[%s4309_s0 + $0x250] sm:$0xff]  ;;  %v2065_v45 = vld [vmem:[%s4309_s0 + $0x260] sm:$0xff]  ;;  %v2489_v46 = vpack.c.bf16 %v2054_v42, %v2052_v41  ;;  %v2057_v48 = vld [vmem:[%s4309_s0 + $0x228] sm:$0xff] }
  0x1b   :  { %2476 = vmatprep.subr.bf16.mxu1 %v2475_v8  ;;  %2470 = vmatpush1.bf16.msra.mxu0 %v2469_v9  ;;  %v2497_v47 = vpack.c.bf16 %v2065_v45, %v2063_v44  ;;  %v2068_v49 = vld [vmem:[%s4309_s0 + $0x278] sm:$0xff]  ;;  %v2056_v50 = vld [vmem:[%s4309_s0 + $0x220] sm:$0xff]  ;;  %v2067_v51 = vld [vmem:[%s4309_s0 + $0x270] sm:$0xff] }
  0x1c   :  { %2478 = vmatpush1.bf16.msra.mxu1 %v2477_v10  ;;  %2472 = vmatprep.subr.bf16.mxu0 %v2471_v11  ;;  %v1181_v52 = vld [vmem:[%s4311_s2 + $0x88] sm:$0xff]  ;;  %v1164_v53 = vld [vmem:[%s4311_s2] sm:$0xff]  ;;  %v1182_v62 = vld [vmem:[%s4311_s2 + $0x90] sm:$0xff] }
  0x1d   :  { %2480 = vmatprep.subr.bf16.mxu1 %v2479_v14  ;;  %510 = vmatprep.mubr.f32.mxu0 %v2756_v3  ;;  %v1165_v55 = vld [vmem:[%s4311_s2 + $0x8] sm:$0xff]  ;;  %v1196_v59 = vld [vmem:[%s4311_s2 + $0x100] sm:$0xff]  ;;  %v1183_v63 = vld [vmem:[%s4311_s2 + $0x98] sm:$0xff] }
  0x1e   :  { %610 = vmatprep.mubr.f32.mxu1 %v2756_v3  ;;  %v1213_v56 = vld [vmem:[%s4311_s2 + $0x188] sm:$0xff]  ;;  %v2501_v57 = vpack.c.bf16 %v1165_v55, %v1164_v53  ;;  %v2503_v0 = vpack.c.bf16 %v1183_v63, %v1182_v62  ;;  %v1166_v1 = vld [vmem:[%s4311_s2 + $0x10] sm:$0xff]  ;;  %v1167_v2 = vld [vmem:[%s4311_s2 + $0x18] sm:$0xff] }
  0x1f   :  { %2474 = vmatpush1.bf16.msra.mxu0 %v2473_v17  ;;  %v1197_v60 = vld [vmem:[%s4311_s2 + $0x108] sm:$0xff]  ;;  %v1214_v4 = vld [vmem:[%s4311_s2 + $0x190] sm:$0xff]  ;;  %v2505_v5 = vpack.c.bf16 %v1167_v2, %v1166_v1  ;;  %v1215_v6 = vld [vmem:[%s4311_s2 + $0x198] sm:$0xff] }
  0x20   :  { %2482 = vmatpush1.bf16.msra.mxu1 %v2481_v18  ;;  %454 = vmatprep.subr.mxu0 %v2035_v19  ;;  %v2533_v61 = vpack.c.bf16 %v1197_v60, %v1196_v59  ;;  %v1198_v7 = vld [vmem:[%s4311_s2 + $0x110] sm:$0xff]  ;;  %v1199_v8 = vld [vmem:[%s4311_s2 + $0x118] sm:$0xff]  ;;  %v2535_v9 = vpack.c.bf16 %v1215_v6, %v1214_v4  ;;  %v1184_v11 = vld [vmem:[%s4311_s2 + $0xa0] sm:$0xff] }
  0x21   :  { %554 = vmatprep.subr.mxu1 %v2046_v20  ;;  %v2537_v10 = vpack.c.bf16 %v1199_v8, %v1198_v7  ;;  %v1185_v12 = vld [vmem:[%s4311_s2 + $0xa8] sm:$0xff]  ;;  %v1168_v13 = vld [vmem:[%s4311_s2 + $0x20] sm:$0xff]  ;;  %v1187_v24 = vld [vmem:[%s4311_s2 + $0xb8] sm:$0xff] }
  0x22   :  { %v2507_v14 = vpack.c.bf16 %v1185_v12, %v1184_v11  ;;  %v1169_v15 = vld [vmem:[%s4311_s2 + $0x28] sm:$0xff]  ;;  %v1216_v16 = vld [vmem:[%s4311_s2 + $0x1a0] sm:$0xff]  ;;  %v1170_v25 = vld [vmem:[%s4311_s2 + $0x30] sm:$0xff] }
  0x23   :  { %455 = vmatpush1.msra.mxu0 %v2034_v22  ;;  %v1217_v17 = vld [vmem:[%s4311_s2 + $0x1a8] sm:$0xff]  ;;  %v2509_v18 = vpack.c.bf16 %v1169_v15, %v1168_v13  ;;  %v1200_v20 = vld [vmem:[%s4311_s2 + $0x120] sm:$0xff]  ;;  %v1186_v22 = vld [vmem:[%s4311_s2 + $0xb0] sm:$0xff] }
  0x24   :  { %555 = vmatpush1.msra.mxu1 %v2045_v33  ;;  %2036 = vmatmul.mubr.msk.f32.vlgmr.msra.gmra.mrb[4].mxu0 %vm28_vm0, %v2856_v32  ;;  %v2539_v19 = vpack.c.bf16 %v1217_v17, %v1216_v16  ;;  %v1201_v21 = vld [vmem:[%s4311_s2 + $0x128] sm:$0xff]  ;;  %v1171_v26 = vld [vmem:[%s4311_s2 + $0x38] sm:$0xff]  ;;  %v2511_v27 = vpack.c.bf16 %v1187_v24, %v1186_v22  ;;  %v1218_v28 = vld [vmem:[%s4311_s2 + $0x1b0] sm:$0xff] }
  0x25   :  { %2047 = vmatmul.mubr.msk.f32.vlgmr.msra.gmra.mrb[4].mxu1 %vm28_vm0, %v2856_v32  ;;  %2484 = vmatprep.subr.bf16.mxu0 %v2483_v34  ;;  %v2541_v23 = vpack.c.bf16 %v1201_v21, %v1200_v20  ;;  %v1219_v29 = vld [vmem:[%s4311_s2 + $0x1b8] sm:$0xff]  ;;  %v2513_v30 = vpack.c.bf16 %v1171_v26, %v1170_v25  ;;  %v1202_v33 = vld [vmem:[%s4311_s2 + $0x130] sm:$0xff]  ;;  %v1188_v36 = vld [vmem:[%s4311_s2 + $0xc0] sm:$0xff] }
  0x26   :  { %2492 = vmatprep.subr.bf16.mxu1 %v2491_v37  ;;  %2486 = vmatpush1.bf16.msra.mxu0 %v2485_v38  ;;  %v2543_v31 = vpack.c.bf16 %v1219_v29, %v1218_v28  ;;  %v1203_v34 = vld [vmem:[%s4311_s2 + $0x138] sm:$0xff]  ;;  %v1189_v37 = vld [vmem:[%s4311_s2 + $0xc8] sm:$0xff]  ;;  %v1220_v41 = vld [vmem:[%s4311_s2 + $0x1c0] sm:$0xff] }
  0x27   :  { %2494 = vmatpush1.bf16.msra.mxu1 %v2493_v39  ;;  %2488 = vmatprep.subr.bf16.mxu0 %v2487_v40  ;;  %v2545_v35 = vpack.c.bf16 %v1203_v34, %v1202_v33  ;;  %v2515_v38 = vpack.c.bf16 %v1189_v37, %v1188_v36  ;;  %v1172_v39 = vld [vmem:[%s4311_s2 + $0x40] sm:$0xff]  ;;  %v1173_v40 = vld [vmem:[%s4311_s2 + $0x48] sm:$0xff]  ;;  %v1223_v53 = vld [vmem:[%s4311_s2 + $0x1d8] sm:$0xff] }
  0x28   :  { %2496 = vmatprep.subr.bf16.mxu1 %v2495_v43  ;;  %710 = vmatprep.mubr.f32.mxu0 %v2756_v3  ;;  %v2517_v42 = vpack.c.bf16 %v1173_v40, %v1172_v39  ;;  %v1221_v43 = vld [vmem:[%s4311_s2 + $0x1c8] sm:$0xff]  ;;  %v1204_v44 = vld [vmem:[%s4311_s2 + $0x140] sm:$0xff]  ;;  %v1194_v7 = vld [vmem:[%s4311_s2 + $0xf0] sm:$0xff] }
  0x29   :  { %810 = vmatprep.mubr.f32.mxu1 %v2756_v3  ;;  %v1180_v3 = vld [vmem:[%s4311_s2 + $0x80] sm:$0xff]  ;;  %v1205_v45 = vld [vmem:[%s4311_s2 + $0x148] sm:$0xff]  ;;  %v1195_v8 = vld [vmem:[%s4311_s2 + $0xf8] sm:$0xff] }
  0x2a   :  { %2490 = vmatpush1.bf16.msra.mxu0 %v2489_v46  ;;  %v2499_v54 = vpack.c.bf16 %v1181_v52, %v1180_v3  ;;  %v2547_v46 = vpack.c.bf16 %v1221_v43, %v1220_v41  ;;  %v1175_v3 = vld [vmem:[%s4311_s2 + $0x58] sm:$0xff]  ;;  %v1222_v52 = vld [vmem:[%s4311_s2 + $0x1d0] sm:$0xff]  ;;  %v1193_v59 = vld [vmem:[%s4311_s2 + $0xe8] sm:$0xff] }
  0x2b   :  { %2498 = vmatpush1.bf16.msra.mxu1 %v2497_v47  ;;  %654 = vmatprep.subr.mxu0 %v2057_v48  ;;  %v2549_v47 = vpack.c.bf16 %v1205_v45, %v1204_v44  ;;  %v1190_v48 = vld [vmem:[%s4311_s2 + $0xd0] sm:$0xff]  ;;  %v2551_v55 = vpack.c.bf16 %v1223_v53, %v1222_v52  ;;  %v1177_v62 = vld [vmem:[%s4311_s2 + $0x68] sm:$0xff]  ;;  %v1224_v63 = vld [vmem:[%s4311_s2 + $0x1e0] sm:$0xff] }
  0x2c   :  { %754 = vmatprep.subr.mxu1 %v2068_v49  ;;  %v1191_v49 = vld [vmem:[%s4311_s2 + $0xd8] sm:$0xff]  ;;  %v1225_v1 = vld [vmem:[%s4311_s2 + $0x1e8] sm:$0xff]  ;;  %v1208_v2 = vld [vmem:[%s4311_s2 + $0x160] sm:$0xff] }
  0x2d   :  { %v1209_v4 = vld [vmem:[%s4311_s2 + $0x168] sm:$0xff]  ;;  %v1179_v11 = vld [vmem:[%s4311_s2 + $0x78] sm:$0xff]  ;;  %v1226_v12 = vld [vmem:[%s4311_s2 + $0x1f0] sm:$0xff] }
  0x2e   :  { %655 = vmatpush1.msra.mxu0 %v2056_v50  ;;  %v1174_v50 = vld [vmem:[%s4311_s2 + $0x50] sm:$0xff]  ;;  %v2557_v6 = vpack.c.bf16 %v1209_v4, %v1208_v2  ;;  %v1211_v16 = vld [vmem:[%s4311_s2 + $0x178] sm:$0xff]  ;;  %v1245_v20 = vld [vmem:[%s4311_s2 + $0x288] sm:$0xff] }
  0x2f   :  { %755 = vmatpush1.msra.mxu1 %v2067_v51  ;;  %2058 = vmatmul.mubr.msk.f32.vlgmr.msra.gmra.mrb[6].mxu0 %vm28_vm0, %v2856_v32  ;;  %v2519_v51 = vpack.c.bf16 %v1191_v49, %v1190_v48  ;;  %v1210_v15 = vld [vmem:[%s4311_s2 + $0x170] sm:$0xff]  ;;  %v1276_v22 = vld [vmem:[%s4311_s2 + $0x380] sm:$0xff]  ;;  %v3263_v26 = vld [vmem:[%s4311_s2 + $0x208] sm:$0xff] }
  0x30   :  { %2069 = vmatmul.mubr.msk.f32.vlgmr.msra.gmra.mrb[6].mxu1 %vm28_vm0, %v2856_v32  ;;  %v1212_v32 = vld [vmem:[%s4311_s2 + $0x180] sm:$0xff]  ;;  %2500 = vmatprep.subr.bf16.mxu0 %v2499_v54  ;;  %v2521_v54 = vpack.c.bf16 %v1175_v3, %v1174_v50  ;;  %v3273_v28 = vld [vmem:[%s4311_s2 + $0x308] sm:$0xff]  ;;  %v3278_v29 = vld [vmem:[%s4311_s2 + $0x290] sm:$0xff] }
  0x31   :  { %v2531_v58 = vpack.c.bf16 %v1213_v56, %v1212_v32  ;;  %2502 = vmatpush3.bf16.msra.mxu0 %v2501_v57  ;;  %v1206_v32 = vld [vmem:[%s4311_s2 + $0x150] sm:$0xff]  ;;  %v1207_v56 = vld [vmem:[%s4311_s2 + $0x158] sm:$0xff]  ;;  %v3258_v25 = vld [vmem:[%s4311_s2 + $0x200] sm:$0xff] }
  0x32   :  { %2504 = vmatprep.subr.bf16.mxu0 %v2503_v0  ;;  %v2553_v57 = vpack.c.bf16 %v1207_v56, %v1206_v32  ;;  %v3293_v33 = vld [vmem:[%s4311_s2 + $0x218] sm:$0xff]  ;;  %v3298_v34 = vld [vmem:[%s4311_s2 + $0x390] sm:$0xff]  ;;  %v3323_v39 = vld [vmem:[%s4311_s2 + $0x2a8] sm:$0xff] }
  0x33   :  { %2532 = vmatprep.subr.bf16.mxu1 %v2531_v58  ;;  %v1192_v58 = vld [vmem:[%s4311_s2 + $0xe0] sm:$0xff]  ;;  %v3308_v36 = vld [vmem:[%s4311_s2 + $0x310] sm:$0xff]  ;;  %v3313_v37 = vld [vmem:[%s4311_s2 + $0x318] sm:$0xff] }
  0x34   :  { %2534 = vmatpush3.bf16.msra.mxu1 %v2533_v61  ;;  %v2523_v60 = vpack.c.bf16 %v1193_v59, %v1192_v58  ;;  %v1176_v61 = vld [vmem:[%s4311_s2 + $0x60] sm:$0xff]  ;;  %v3333_v41 = vld [vmem:[%s4311_s2 + $0x228] sm:$0xff]  ;;  %v3368_v48 = vld [vmem:[%s4311_s2 + $0x230] sm:$0xff] }
  0x35   :  { %2506 = vmatpush3.bf16.msra.mxu0 %v2505_v5  ;;  %2536 = vmatprep.subr.bf16.mxu1 %v2535_v9  ;;  %v2525_v0 = vpack.c.bf16 %v1177_v62, %v1176_v61  ;;  %v2555_v5 = vpack.c.bf16 %v1225_v1, %v1224_v63  ;;  %v2527_v9 = vpack.c.bf16 %v1195_v8, %v1194_v7  ;;  %v3328_v40 = vld [vmem:[%s4311_s2 + $0x220] sm:$0xff]  ;;  %v3343_v43 = vld [vmem:[%s4311_s2 + $0x3a8] sm:$0xff]  ;;  %v3373_v49 = vld [vmem:[%s4311_s2 + $0x238] sm:$0xff] }
  0x36   :  { %2508 = vmatprep.subr.bf16.mxu0 %v2507_v14  ;;  %v1227_v14 = vld [vmem:[%s4311_s2 + $0x1f8] sm:$0xff]  ;;  %v3348_v44 = vld [vmem:[%s4311_s2 + $0x320] sm:$0xff]  ;;  %v3353_v45 = vld [vmem:[%s4311_s2 + $0x328] sm:$0xff]  ;;  %4341 = vst [vmem:[#allocation6_spill] sm:$0xff] %v3368_v48 }
  0x37   :  { %v2559_v17 = vpack.c.bf16 %v1227_v14, %v1226_v12  ;;  %4337 = vst [vmem:[#allocation2_spill] sm:$0xff] %v3348_v44  ;;  %4338 = vst [vmem:[#allocation3_spill] sm:$0xff] %v3353_v45  ;;  %v3382_v3 = vld [vmem:[%s4311_s2 + $0x3b0] sm:$0xff]  ;;  %v3387_v52 = vld [vmem:[%s4311_s2 + $0x3b8] sm:$0xff] }
  0x38   :  { %2538 = vmatpush3.bf16.msra.mxu1 %v2537_v10  ;;  %v1178_v10 = vld [vmem:[%s4311_s2 + $0x70] sm:$0xff]  ;;  %4342 = vst [vmem:[#allocation7_spill] sm:$0xff] %v3373_v49  ;;  %4343 = vst [vmem:[#allocation8_spill] sm:$0xff] %v3382_v3  ;;  %v3410_v58 = vld [vmem:[%s4311_s2 + $0x2c0] sm:$0xff] }
  0x39   :  { %2540 = vmatprep.subr.bf16.mxu1 %v2539_v19  ;;  %2510 = vmatpush3.bf16.msra.mxu0 %v2509_v18  ;;  %v2529_v13 = vpack.c.bf16 %v1179_v11, %v1178_v10  ;;  %v2561_v18 = vpack.c.bf16 %v1211_v16, %v1210_v15  ;;  %v1244_v19 = vld [vmem:[%s4311_s2 + $0x280] sm:$0xff]  ;;  %4344 = vst [vmem:[#allocation9_spill] sm:$0xff] %v3387_v52  ;;  %v3392_v53 = vld [vmem:[%s4311_s2 + $0x330] sm:$0xff]  ;;  %4347 = vst [vmem:[#allocation12_spill] sm:$0xff] %v3410_v58 }
  0x3a   :  { %2512 = vmatprep.subr.bf16.mxu0 %v2511_v27  ;;  %v2563_v21 = vpack.c.bf16 %v1245_v20, %v1244_v19  ;;  %v3268_v27 = vld [vmem:[%s4311_s2 + $0x300] sm:$0xff]  ;;  %4345 = vst [vmem:[#allocation10_spill] sm:$0xff] %v3392_v53  ;;  %v3415_v59 = vld [vmem:[%s4311_s2 + $0x2c8] sm:$0xff] }
  0x3b   :  { %4348 = vst [vmem:[#allocation13_spill] sm:$0xff] %v3415_v59 }
  0x3c   :  { %2542 = vmatpush3.bf16.msra.mxu1 %v2541_v23  ;;  %v1277_v23 = vld [vmem:[%s4311_s2 + $0x388] sm:$0xff] }
  0x3d   :  { %2544 = vmatprep.subr.bf16.mxu1 %v2543_v31  ;;  %2514 = vmatpush3.bf16.msra.mxu0 %v2513_v30  ;;  %v2595_v24 = vpack.c.bf16 %v1277_v23, %v1276_v22  ;;  %v3283_v30 = vld [vmem:[%s4311_s2 + $0x298] sm:$0xff]  ;;  %v3288_v31 = vld [vmem:[%s4311_s2 + $0x210] sm:$0xff] }
  0x3e   :  { %2516 = vmatprep.subr.bf16.mxu0 %v2515_v38  ;;  %v3318_v38 = vld [vmem:[%s4311_s2 + $0x2a0] sm:$0xff] }
  0x40   :  { %2546 = vmatpush3.bf16.msra.mxu1 %v2545_v35  ;;  %v3303_v35 = vld [vmem:[%s4311_s2 + $0x398] sm:$0xff] }
  0x41   :  { %2518 = vmatpush3.bf16.msra.mxu0 %v2517_v42  ;;  %2548 = vmatprep.subr.bf16.mxu1 %v2547_v46  ;;  %v3338_v42 = vld [vmem:[%s4311_s2 + $0x3a0] sm:$0xff]  ;;  %v3358_v46 = vld [vmem:[%s4311_s2 + $0x2b0] sm:$0xff] }
  0x42   :  { %2520 = vmatprep.subr.bf16.mxu0 %v2519_v51  ;;  %4339 = vst [vmem:[#allocation4_spill] sm:$0xff] %v3358_v46 }
  0x44   :  { %2550 = vmatpush3.bf16.msra.mxu1 %v2549_v47  ;;  %v3363_v47 = vld [vmem:[%s4311_s2 + $0x2b8] sm:$0xff] }
  0x45   :  { %2552 = vmatprep.subr.bf16.mxu1 %v2551_v55  ;;  %2522 = vmatpush3.bf16.msra.mxu0 %v2521_v54  ;;  %4340 = vst [vmem:[#allocation5_spill] sm:$0xff] %v3363_v47 }
  0x46   :  { %2524 = vmatprep.subr.bf16.mxu0 %v2523_v60 }
  0x48   :  { %2554 = vmatpush3.bf16.msra.mxu1 %v2553_v57  ;;  %v3405_v57 = vld [vmem:[%s4311_s2 + $0x338] sm:$0xff] }
  0x49   :  { %2526 = vmatpush3.bf16.msra.mxu0 %v2525_v0  ;;  %2556 = vmatprep.subr.bf16.mxu1 %v2555_v5  ;;  %4346 = vst [vmem:[#allocation11_spill] sm:$0xff] %v3405_v57 }
  0x4a   :  { %2528 = vmatprep.subr.bf16.mxu0 %v2527_v9 }
  0x4c   :  { %2558 = vmatpush3.bf16.msra.mxu1 %v2557_v6 }
  0x4d   :  { %2530 = vmatpush3.bf16.msra.mxu0 %v2529_v13  ;;  %2560 = vmatprep.subr.bf16.mxu1 %v2559_v17 }
  0x4e   :  { %2564 = vmatprep.subr.bf16.mxu0 %v2563_v21 }
  0x50   :  { %2562 = vmatpush3.bf16.msra.mxu1 %v2561_v18 }
  0x51   :  { %2596 = vmatprep.subr.bf16.mxu1 %v2595_v24 }
  0xe1   :  { %v98_v60 = vpop.f32.mrb[0].mxu0 }
  0xe2   :  { %v3425_v1 = vmax.f32 %v98_v60, 0.0  ;;  %v212_v2 = vpop.f32.mrb[0].mxu1  ;;  %v100_v4 = vpop.f32.mrb[1].mxu0 }
  0xe3   :  { %v3433_v8 = vmax.f32 %v212_v2, 0.0  ;;  %v104_v9 = vmax.f32 %v100_v4, 0.0  ;;  %v214_v10 = vpop.f32.mrb[1].mxu1 }
  0xe4   :  { %4349 = vst [vmem:[#allocation14_spill] sm:$0xff] %v3425_v1  ;;  %v218_v13 = vmax.f32 %v214_v10, 0.0  ;;  %v107_v14 = vrot.slane %v3425_v1, 1  ;;  %v111_v15 = vrot.slane %v3425_v1, 2  ;;  %v115_v16 = vrot.slane %v3425_v1, 3 }
  0xe5   :  { %4350 = vst [vmem:[#allocation15_spill] sm:$0xff] %v3433_v8  ;;  %v4314_v17 = vrot.slane %v3433_v8, 7  ;;  %v108_v18 = vrot.slane %v104_v9, 1  ;;  %v112_v19 = vrot.slane %v104_v9, 2  ;;  %v116_v20 = vrot.slane %v104_v9, 3 }
  0xe6   :  { %v234_v21 = vrot.slane %v218_v13, 7  ;;  %v1048_v22 = vsel %vm1045_vm1, %v107_v14, %v3433_v8  ;;  %v2073_v23 = vrot.slane %v218_v13, 9  ;;  %v2075_v24 = vrot.slane %v218_v13, 10 }
  0xe7   :  { %v1046_v60 = vsel %vm1045_vm1, %v3425_v1, %v4314_v17  ;;  %v1049_v2 = vsel %vm1045_vm1, %v108_v18, %v218_v13  ;;  %v2072_v4 = vrot.slane %v3433_v8, 9  ;;  %v2074_v10 = vrot.slane %v3433_v8, 10  ;;  %v3464_v18 = vld [vmem:[%s4311_s2 + $0x240] sm:$0xff] }
  0xe8   :  { %v1047_v11 = vsel %vm1045_vm1, %v104_v9, %v234_v21  ;;  %v1051_v12 = vsel %vm1045_vm1, %v112_v19, %v2073_v23  ;;  %v3455_v14 = vsel %vm1045_vm1, %v116_v20, %v2075_v24  ;;  %v120_v6 = vrot.slane %v104_v9, 4  ;;  %4351 = vst [vmem:[#allocation16_spill] sm:$0xff] %v3464_v18  ;;  %v3469_v19 = vld [vmem:[%s4311_s2 + $0x248] sm:$0xff]  ;;  %v3477_v24 = vld [vmem:[%s4311_s2 + $0x3c0] sm:$0xff] }
  0xe9   :  { %v1050_v7 = vsel %vm1045_vm1, %v111_v15, %v2072_v4  ;;  %v3459_v0 = vsel %vm1045_vm1, %v115_v16, %v2074_v10  ;;  %v2077_v17 = vrot.slane %v218_v13, 11  ;;  %v124_v5 = vrot.slane %v104_v9, 5  ;;  %4352 = vst [vmem:[#allocation17_spill] sm:$0xff] %v3469_v19  ;;  %4353 = vst [vmem:[#allocation18_spill] sm:$0xff] %v3477_v24  ;;  %v3482_v4 = vld [vmem:[%s4311_s2 + $0x3c8] sm:$0xff] }
  0xea   :  { %v2079_v20 = vrot.slane %v218_v13, 12  ;;  %v119_v23 = vrot.slane %v3425_v1, 4  ;;  %v2076_v15 = vrot.slane %v3433_v8, 11  ;;  %v123_v16 = vrot.slane %v3425_v1, 5  ;;  %4354 = vst [vmem:[#allocation19_spill] sm:$0xff] %v3482_v4 }
  0xeb   :  { %v1055_v10 = vsel %vm1045_vm1, %v120_v6, %v2077_v17  ;;  %v2078_v62 = vrot.slane %v3433_v8, 12  ;;  %v128_v63 = vrot.slane %v104_v9, 6  ;;  %v2081_v56 = vrot.slane %v218_v13, 13 }
  0xec   :  { %v312_v61 = vpop.f32.mrb[2].mxu0  ;;  %v1057_v55 = vsel %vm1045_vm1, %v124_v5, %v2079_v20  ;;  %v3488_v32 = vsel %vm1045_vm1, %v119_v23, %v2076_v15  ;;  %v132_v54 = vrot.slane %v104_v9, 7  ;;  %v848_v51 = vrot.slane %v234_v21, 7 }
  0xed   :  { %v3490_v50 = vmax.f32 %v312_v61, 0.0  ;;  %v412_v53 = vpop.f32.mrb[2].mxu1  ;;  %v314_v57 = vpop.f32.mrb[3].mxu0  ;;  %v3495_v6 = vsel %vm1045_vm1, %v123_v16, %v2078_v62  ;;  %v3498_v13 = vsel %vm1045_vm1, %v128_v63, %v2081_v56 }
  0xee   :  { %4355 = vst [vmem:[#allocation20_spill] sm:$0xff] %v3498_v13  ;;  %v3500_v17 = vmax.f32 %v412_v53, 0.0  ;;  %v3502_v5 = vmax.f32 %v314_v57, 0.0  ;;  %v414_v20 = vpop.f32.mrb[3].mxu1  ;;  %v3507_v9 = vsel %vm1045_vm1, %v132_v54, %v848_v51 }
  0xef   :  { %4356 = vst [vmem:[#allocation21_spill] sm:$0xff] %v3507_v9  ;;  %v3509_v21 = vmax.f32 %v414_v20, 0.0  ;;  %v4322_v23 = vrot.slane %v3490_v50, 6  ;;  %v2082_v62 = vrot.slane %v3490_v50, 7  ;;  %v1067_v56 = vsel %vm1062_vm2, %v1050_v7, %v3490_v50 }
  0xf0   :  { %v4323_v53 = vrot.slane %v3502_v5, 6  ;;  %v429_v57 = vrot.slane %v3500_v17, 5  ;;  %v2083_v63 = vrot.slane %v3502_v5, 7  ;;  %v2094_v15 = vrot.slane %v3500_v17, 6 }
  0xf1   :  { %v430_v51 = vrot.slane %v3509_v21, 5  ;;  %v1063_v54 = vsel %vm1062_vm2, %v1046_v60, %v4322_v23  ;;  %v2095_v16 = vrot.slane %v3509_v21, 6  ;;  %v1065_v20 = vsel %vm1062_vm2, %v1048_v22, %v2082_v62 }
  0xf2   :  { %v1064_v7 = vsel %vm1062_vm2, %v1047_v11, %v4323_v53  ;;  %v1080_v1 = vsel %vm1079_vm3, %v1063_v54, %v429_v57  ;;  %v1066_v61 = vsel %vm1062_vm2, %v1049_v2, %v2083_v63  ;;  %v1082_v18 = vsel %vm1079_vm3, %v1065_v20, %v2094_v15 }
  0xf3   :  { %v1081_v19 = vsel %vm1079_vm3, %v1064_v7, %v430_v51  ;;  %v1083_v24 = vsel %vm1079_vm3, %v1066_v61, %v2095_v16  ;;  %v2097_v60 = vrot.slane %v3509_v21, 7  ;;  %v1068_v22 = vsel %vm1062_vm2, %v1051_v12, %v3502_v5 }
  0xf4   :  { %v2087_v62 = vrot.slane %v3502_v5, 9  ;;  %v2096_v11 = vrot.slane %v3500_v17, 7  ;;  %v2086_v23 = vrot.slane %v3490_v50, 9  ;;  %v2089_v54 = vrot.slane %v3502_v5, 10 }
  0xf5   :  { %v1085_v2 = vsel %vm1079_vm3, %v1068_v22, %v2097_v60  ;;  %v2101_v63 = vrot.slane %v3509_v21, 9  ;;  %v2091_v15 = vrot.slane %v3502_v5, 11  ;;  %v904_v61 = vrot.slane %v430_v51, 5 }
  0xf6   :  { %v1070_v16 = vsel %vm1062_vm2, %v3455_v14, %v2087_v62  ;;  %v1084_v12 = vsel %vm1079_vm3, %v1067_v56, %v2096_v11  ;;  %v1069_v20 = vsel %vm1062_vm2, %v3459_v0, %v2086_v23  ;;  %v1072_v7 = vsel %vm1062_vm2, %v1055_v10, %v2089_v54 }
  0xf7   :  { %v512_v53 = vpop.f32.mrb[4].mxu0  ;;  %v1087_v4 = vsel %vm1079_vm3, %v1070_v16, %v3509_v21  ;;  %v1086_v60 = vsel %vm1079_vm3, %v1069_v20, %v3500_v17  ;;  %v1089_v22 = vsel %vm1079_vm3, %v1072_v7, %v2101_v63  ;;  %v1074_v51 = vsel %vm1062_vm2, %v1057_v55, %v2091_v15 }
  0xf8   :  { %v3555_v8 = vmax.f32 %v512_v53, 0.0  ;;  %v612_v14 = vpop.f32.mrb[4].mxu1  ;;  %v514_v56 = vpop.f32.mrb[5].mxu0  ;;  %v1091_v62 = vsel %vm1079_vm3, %v1074_v51, %v904_v61  ;;  %v3565_v63 = vrot.slane %v429_v57, 5 }
  0xf9   :  { %v3560_v23 = vmax.f32 %v612_v14, 0.0  ;;  %v3562_v11 = vmax.f32 %v514_v56, 0.0  ;;  %v614_v54 = vpop.f32.mrb[5].mxu1 }
  0xfa   :  { %v3567_v55 = vmax.f32 %v614_v54, 0.0  ;;  %v527_v53 = vrot.slane %v3555_v8, 4  ;;  %v2106_v15 = vrot.slane %v3555_v8, 5  ;;  %v2108_v61 = vrot.slane %v3555_v8, 6 }
  0xfb   :  { %v528_v20 = vrot.slane %v3562_v11, 4  ;;  %v625_v7 = vrot.slane %v3560_v23, 3  ;;  %v2107_v51 = vrot.slane %v3562_v11, 5  ;;  %v2118_v14 = vrot.slane %v3560_v23, 4 }
  0xfc   :  { %v626_v56 = vrot.slane %v3567_v55, 3  ;;  %v1097_v57 = vsel %vm1096_vm4, %v1080_v1, %v527_v53  ;;  %v2119_v54 = vrot.slane %v3567_v55, 4  ;;  %v1099_v16 = vsel %vm1096_vm4, %v1082_v18, %v2106_v15 }
  0xfd   :  { %v1098_v10 = vsel %vm1096_vm4, %v1081_v19, %v528_v20  ;;  %v1114_v0 = vsel %vm1113_vm5, %v1097_v57, %v625_v7  ;;  %v1100_v58 = vsel %vm1096_vm4, %v1083_v24, %v2107_v51  ;;  %v1116_v59 = vsel %vm1113_vm5, %v1099_v16, %v2118_v14 }
  0xfe   :  { %v1115_v48 = vsel %vm1113_vm5, %v1098_v10, %v626_v56  ;;  %v1117_v49 = vsel %vm1113_vm5, %v1100_v58, %v2119_v54  ;;  %v2109_v1 = vrot.slane %v3562_v11, 6  ;;  %v2121_v9 = vrot.slane %v3567_v55, 5 }
  0xff   :  { %v2111_v18 = vrot.slane %v3562_v11, 7  ;;  %v960_v15 = vrot.slane %v626_v56, 3  ;;  %v2120_v19 = vrot.slane %v3560_v23, 5  ;;  %v1101_v57 = vsel %vm1096_vm4, %v1084_v12, %v2108_v61 }
 0x100   :  { %v1102_v24 = vsel %vm1096_vm4, %v1085_v2, %v2109_v1  ;;  %v2110_v16 = vrot.slane %v3555_v8, 7  ;;  %v959_v51 = vrot.slane %v625_v7, 3  ;;  %v932_v10 = vrot.slane %v528_v20, 4 }
 0x101   :  { %v1119_v14 = vsel %vm1113_vm5, %v1102_v24, %v2121_v9  ;;  %v1104_v58 = vsel %vm1096_vm4, %v1087_v4, %v2111_v18  ;;  %v1118_v54 = vsel %vm1113_vm5, %v1101_v57, %v2120_v19  ;;  %v2123_v3 = vrot.slane %v3567_v55, 7 }
 0x102   :  { %v712_v52 = vpop.f32.mrb[6].mxu0  ;;  %v1121_v56 = vsel %vm1113_vm5, %v1104_v58, %v960_v15  ;;  %v1103_v44 = vsel %vm1096_vm4, %v1086_v60, %v2110_v16  ;;  %v1106_v12 = vsel %vm1096_vm4, %v1089_v22, %v932_v10  ;;  %v2113_v2 = vrot.slane %v3562_v11, 9 }
 0x103   :  { %v3601_v61 = vmax.f32 %v712_v52, 0.0  ;;  %v812_v20 = vpop.f32.mrb[6].mxu1  ;;  %v714_v7 = vpop.f32.mrb[7].mxu0  ;;  %v1120_v9 = vsel %vm1113_vm5, %v1103_v44, %v959_v51  ;;  %v1123_v4 = vsel %vm1113_vm5, %v1106_v12, %v2123_v3  ;;  %v3605_v1 = vrot.slane %v527_v53, 4 }
 0x104   :  { %v3607_v18 = vmax.f32 %v812_v20, 0.0  ;;  %v3609_v19 = vmax.f32 %v714_v7, 0.0  ;;  %v814_v15 = vpop.f32.mrb[7].mxu1  ;;  %v1108_v60 = vsel %vm1096_vm4, %v1091_v62, %v2113_v2 }
 0x105   :  { %v3613_v57 = vmax.f32 %v814_v15, 0.0  ;;  %v723_v52 = vrot.slane %v3601_v61, 2  ;;  %v2130_v24 = vrot.slane %v3601_v61, 3  ;;  %v2132_v44 = vrot.slane %v3601_v61, 5 }
 0x106   :  { %v724_v3 = vrot.slane %v3609_v19, 2  ;;  %v821_v53 = vrot.slane %v3607_v18, 1  ;;  %v2131_v16 = vrot.slane %v3609_v19, 3  ;;  %v2133_v51 = vrot.slane %v3609_v19, 5 }
 0x107   :  { %v822_v62 = vrot.slane %v3613_v57, 1  ;;  %v1131_v10 = vsel %vm1130_vm7, %v1114_v0, %v723_v52  ;;  %v1133_v58 = vsel %vm1130_vm7, %v1116_v59, %v2130_v24  ;;  %v2143_v12 = vrot.slane %v3613_v57, 3 }
 0x108   :  { %v1132_v2 = vsel %vm1130_vm7, %v1115_v48, %v724_v3  ;;  %v1148_v20 = vsel %vm1147_vm6, %v1131_v10, %v821_v53  ;;  %v1134_v7 = vsel %vm1130_vm7, %v1117_v49, %v2131_v16  ;;  %v1015_v15 = vrot.slane %v821_v53, 1 }
 0x109   :  { %v1149_v22 = vsel %vm1147_vm6, %v1132_v2, %v822_v62  ;;  %v1016_v45 = vrot.slane %v822_v62, 1  ;;  %v988_v46 = vrot.slane %v724_v3, 2  ;;  %v2145_v47 = vrot.slane %v3613_v57, 4 }
 0x10a   :  { %1491 = vmatprep.mubr.f32.mxu0 %v1149_v22  ;;  %v1150_v0 = vsel %vm1147_vm6, %v1133_v58, %v1015_v15  ;;  %v1138_v59 = vsel %vm1130_vm7, %v1121_v56, %v2133_v51  ;;  %v987_v24 = vrot.slane %v723_v52, 2  ;;  %v2142_v13 = vrot.slane %v3607_v18, 3 }
 0x10b   :  { %1492 = vmatmul.mubr.f32.vlgmr.msra.gmra.mrb[8].mxu0 %v1148_v20  ;;  %v1151_v48 = vsel %vm1147_vm6, %v1134_v7, %v1016_v45  ;;  %v1136_v49 = vsel %vm1130_vm7, %v1119_v14, %v988_v46  ;;  %v1155_v53 = vsel %vm1147_vm6, %v1138_v59, %v2145_v47  ;;  %v2144_v16 = vrot.slane %v3607_v18, 4 }
 0x10c   :  { %1561 = vmatprep.mubr.f32.mxu1 %v1151_v48  ;;  %v4357_v22 = vpack.c.bf16 %v3263_v26, %v3258_v25  ;;  %v1153_v3 = vsel %vm1147_vm6, %v1136_v49, %v2143_v12  ;;  %v1135_v56 = vsel %vm1130_vm7, %v1118_v54, %v987_v24  ;;  %v1137_v52 = vsel %vm1130_vm7, %v1120_v9, %v2132_v44 }
 0x10d   :  { %v2135_v51 = vrot.slane %v3609_v19, 6  ;;  %1562 = vmatmul.mubr.f32.vlgmr.msra.gmra.mrb[8].mxu1 %v1150_v0  ;;  %1631 = vmatprep.mubr.f32.mxu0 %v1153_v3  ;;  %v3646_v45 = vsel %vm1147_vm6, %v1135_v56, %v2142_v13  ;;  %v3649_v46 = vsel %vm1147_vm6, %v1137_v52, %v2144_v16  ;;  %v2147_v47 = vrot.slane %v3613_v57, 5  ;;  %v1255_v16 = vld [vmem:[%s4311_s2 + $0x2d8] sm:$0xff] }
 0x10e   :  { %2566 = vmatpush3.bf16.msra.mxu0 %v4357_v22  ;;  %v2137_v25 = vrot.slane %v3609_v19, 7  ;;  %v4358_v26 = vpack.c.bf16 %v3273_v28, %v3268_v27  ;;  %1701 = vmatprep.mubr.f32.mxu1 %v1155_v53  ;;  %v2149_v54 = vrot.slane %v3613_v57, 6  ;;  %v1125_v13 = vsel %vm1113_vm5, %v1108_v60, %v3567_v55  ;;  %v3738_v22 = vld [vmem:[%s4311_s2 + $0x250] sm:$0xff] }
 0x10f   :  { %v1140_v14 = vsel %vm1130_vm7, %v1123_v4, %v2135_v51  ;;  %v2134_v9 = vrot.slane %v3601_v61, 6  ;;  %v4359_v44 = vpack.c.bf16 %v3283_v30, %v3278_v29  ;;  %v4360_v62 = vpack.c.bf16 %v3303_v35, %v3298_v34  ;;  %v4372_v51 = vld [vmem:[#allocation5_spill] sm:$0xff] }
 0x110   :  { %2598 = vmatpush3.bf16.msra.mxu1 %v4358_v26  ;;  %v3668_v27 = vsel %vm1147_vm6, %v1140_v14, %v2147_v47  ;;  %v1142_v28 = vsel %vm1130_vm7, %v1125_v13, %v2137_v25  ;;  %v2146_v4 = vrot.slane %v3607_v18, 5  ;;  %v4361_v10 = vrot.slane %v3490_v50, 10  ;;  %v4373_v47 = vld [vmem:[#allocation4_spill] sm:$0xff]  ;;  %v3754_v26 = vld [vmem:[%s4311_s2 + $0x258] sm:$0xff] }
 0x111   :  { %2568 = vmatprep.subr.bf16.mxu0 %v4359_v44  ;;  %2600 = vmatprep.subr.bf16.mxu1 %v4360_v62  ;;  %v4362_v29 = vpack.c.bf16 %v3293_v33, %v3288_v31  ;;  %v3680_v30 = vsel %vm1147_vm6, %v1142_v28, %v2149_v54  ;;  %v4363_v34 = vrot.slane %v3500_v17, 9  ;;  %v2112_v58 = vrot.slane %v3555_v8, 9  ;;  %v1286_v14 = vld [vmem:[%s4311_s2 + $0x3d0] sm:$0xff]  ;;  %v1287_v54 = vld [vmem:[%s4311_s2 + $0x3d8] sm:$0xff]  ;;  %v4375_v62 = vld [vmem:[#allocation3_spill] sm:$0xff] }
 0x112   :  { %v1071_v60 = vsel %vm1062_vm2, %v3488_v32, %v4361_v10  ;;  %v2136_v12 = vrot.slane %v3601_v61, 7  ;;  %v4364_v2 = vpack.c.bf16 %v3323_v39, %v3318_v38  ;;  %v2148_v31 = vrot.slane %v3607_v18, 6  ;;  %v4376_v28 = vld [vmem:[#allocation2_spill] sm:$0xff] }
 0x113   :  { %2570 = vmatpush3.bf16.msra.mxu0 %v4362_v29  ;;  %v1088_v35 = vsel %vm1079_vm3, %v1071_v60, %v4363_v34  ;;  %v4365_v33 = vrot.slane %v3490_v50, 11  ;;  %v4366_v7 = vrot.slane %v3502_v5, 6  ;;  %v4367_v0 = vpack.c.bf16 %v3313_v37, %v3308_v36  ;;  %v3715_v36 = vld [vmem:[%s4311_s2 + $0x340] sm:$0xff]  ;;  %v3720_v37 = vld [vmem:[%s4311_s2 + $0x348] sm:$0xff]  ;;  %v3774_v60 = vld [vmem:[%s4311_s2 + $0x350] sm:$0xff] }
 0x114   :  { %2572 = vmatprep.subr.bf16.mxu0 %v4364_v2  ;;  %v1105_v32 = vsel %vm1096_vm4, %v1088_v35, %v3605_v1  ;;  %v4368_v38 = vrot.slane %v3560_v23, 7  ;;  %v2103_v59 = vrot.slane %v3509_v21, 11  ;;  %v2115_v24 = vrot.slane %v3562_v11, 10  ;;  %v3779_v29 = vld [vmem:[%s4311_s2 + $0x358] sm:$0xff] }
 0x115   :  { %v1073_v20 = vsel %vm1062_vm2, %v3495_v6, %v4365_v33  ;;  %v876_v15 = vrot.slane %v4366_v7, 6  ;;  %2602 = vmatpush3.bf16.msra.mxu1 %v4367_v0  ;;  %v4369_v6 = vpack.c.bf16 %v3343_v43, %v3338_v42  ;;  %v2127_v49 = vrot.slane %v3567_v55, 9  ;;  %v1254_v43 = vld [vmem:[%s4311_s2 + $0x2d0] sm:$0xff]  ;;  %v4378_v35 = vld [vmem:[#allocation9_spill] sm:$0xff]  ;;  %v4383_v0 = vld [vmem:[#allocation6_spill] sm:$0xff] }
 0x116   :  { %v1122_v39 = vsel %vm1113_vm5, %v1105_v32, %v4368_v38  ;;  %v1090_v1 = vsel %vm1079_vm3, %v1073_v20, %v3565_v63  ;;  %v2151_v53 = vrot.slane %v3613_v57, 7  ;;  %v4370_v42 = vpack.c.bf16 %v3333_v41, %v3328_v40  ;;  %v4371_v41 = vld [vmem:[#allocation20_spill] sm:$0xff]  ;;  %v4381_v20 = vld [vmem:[#allocation21_spill] sm:$0xff] }
 0x117   :  { %2604 = vmatprep.subr.bf16.mxu1 %v4369_v6  ;;  %v1139_v63 = vsel %vm1130_vm7, %v1122_v39, %v2134_v9  ;;  %v1107_v48 = vsel %vm1096_vm4, %v1090_v1, %v2112_v58  ;;  %v1076_v56 = vsel %vm1062_vm2, %v4371_v41, %v876_v15  ;;  %v2093_v52 = vrot.slane %v3502_v5, 13  ;;  %v4379_v58 = vld [vmem:[#allocation8_spill] sm:$0xff]  ;;  %v4382_v15 = vld [vmem:[#allocation7_spill] sm:$0xff]  ;;  %v1256_v39 = vld [vmem:[%s4311_s2 + $0x2e0] sm:$0xff] }
 0x118   :  { %2574 = vmatpush3.bf16.msra.mxu0 %v4370_v42  ;;  %v3741_v3 = vsel %vm1147_vm6, %v1139_v63, %v2146_v4  ;;  %v1124_v40 = vsel %vm1113_vm5, %v1107_v48, %v3560_v23  ;;  %v4374_v25 = vpack.c.bf16 %v4372_v51, %v4373_v47  ;;  %v1093_v5 = vsel %vm1079_vm3, %v1076_v56, %v2103_v59  ;;  %v1257_v1 = vld [vmem:[%s4311_s2 + $0x2e8] sm:$0xff]  ;;  %v4385_v6 = vld [vmem:[#allocation13_spill] sm:$0xff]  ;;  %v4388_v42 = vld [vmem:[#allocation14_spill] sm:$0xff] }
 0x119   :  { %v1141_v13 = vsel %vm1130_vm7, %v1124_v40, %v2136_v12  ;;  %v2105_v9 = vrot.slane %v3509_v21, 12  ;;  %v2117_v44 = vrot.slane %v3562_v11, 11  ;;  %v4377_v4 = vpack.c.bf16 %v4375_v62, %v4376_v28  ;;  %v4392_v41 = vld [vmem:[#allocation15_spill] sm:$0xff]  ;;  %v1288_v28 = vld [vmem:[%s4311_s2 + $0x3e0] sm:$0xff] }
 0x11a   :  { %2576 = vmatprep.subr.bf16.mxu0 %v4374_v25  ;;  %v2613_v10 = vpack.c.bf16 %v3720_v37, %v3715_v36  ;;  %v3782_v21 = vsel %vm1147_vm6, %v1141_v13, %v2148_v31  ;;  %v1110_v11 = vsel %vm1096_vm4, %v1093_v5, %v2115_v24  ;;  %v2129_v34 = vrot.slane %v3567_v55, 10  ;;  %v4386_v36 = vld [vmem:[#allocation12_spill] sm:$0xff]  ;;  %v4394_v25 = vld [vmem:[#allocation19_spill] sm:$0xff] }
 0x11b   :  { %2606 = vmatpush3.bf16.msra.mxu1 %v4377_v4  ;;  %v4380_v12 = vpack.c.bf16 %v4378_v35, %v4379_v58  ;;  %v2583_v2 = vpack.c.bf16 %v1255_v16, %v1254_v43  ;;  %v1127_v32 = vsel %vm1113_vm5, %v1110_v11, %v2127_v49  ;;  %v2141_v33 = vrot.slane %v3609_v19, 9  ;;  %v4389_v16 = vld [vmem:[#allocation11_spill] sm:$0xff]  ;;  %v1240_v58 = vld [vmem:[%s4311_s2 + $0x260] sm:$0xff] }
 0x11c   :  { %v1078_v7 = vsel %vm1062_vm2, %v4381_v20, %v2093_v52  ;;  %v4384_v31 = vpack.c.bf16 %v4382_v15, %v4383_v0  ;;  %v2585_v38 = vpack.c.bf16 %v3754_v26, %v3738_v22  ;;  %v2615_v55 = vpack.c.bf16 %v1287_v54, %v1286_v14  ;;  %v4390_v22 = vld [vmem:[#allocation10_spill] sm:$0xff]  ;;  %v1289_v4 = vld [vmem:[%s4311_s2 + $0x3e8] sm:$0xff] }
 0x11d   :  { %2608 = vmatprep.subr.bf16.mxu1 %v4380_v12  ;;  %v1144_v59 = vsel %vm1130_vm7, %v1127_v32, %v3609_v19  ;;  %v1095_v24 = vsel %vm1079_vm3, %v1078_v7, %v2105_v9  ;;  %v4387_v37 = vpack.c.bf16 %v4385_v6, %v4386_v36  ;;  %v2617_v63 = vpack.c.bf16 %v3779_v29, %v3774_v60  ;;  %v4397_v9 = vld [vmem:[#allocation17_spill] sm:$0xff]  ;;  %v1241_v12 = vld [vmem:[%s4311_s2 + $0x268] sm:$0xff] }
 0x11e   :  { %2578 = vmatpush3.bf16.msra.mxu0 %v4384_v31  ;;  %v3813_v48 = vsel %vm1147_vm6, %v1144_v59, %v2151_v53  ;;  %v1112_v49 = vsel %vm1096_vm4, %v1095_v24, %v2117_v44  ;;  %v127_v43 = vrot.slane %v4388_v42, 6  ;;  %v4391_v40 = vpack.c.bf16 %v4389_v16, %v4390_v22  ;;  %v4395_v53 = vld [vmem:[#allocation18_spill] sm:$0xff]  ;;  %v4398_v44 = vld [vmem:[#allocation16_spill] sm:$0xff]  ;;  %v1259_v7 = vld [vmem:[%s4311_s2 + $0x2f8] sm:$0xff] }
 0x11f   :  { %2580 = vmatprep.subr.bf16.mxu0 %v4387_v37  ;;  %v1129_v19 = vsel %vm1113_vm5, %v1112_v49, %v2129_v34  ;;  %v2080_v56 = vrot.slane %v4392_v41, 13  ;;  %v4393_v52 = vrot.slane %v3490_v50, 6  ;;  %v2102_v47 = vrot.slane %v3500_v17, 11  ;;  %v1291_v24 = vld [vmem:[%s4311_s2 + $0x3f8] sm:$0xff]  ;;  %v1242_v49 = vld [vmem:[%s4311_s2 + $0x270] sm:$0xff]  ;;  %v1308_v22 = vld [vmem:[%s4311_s2 + $0x480] sm:$0xff] }
 0x120   :  { %2610 = vmatpush3.bf16.msra.mxu1 %v4391_v40  ;;  %v4396_v26 = vpack.c.bf16 %v4394_v25, %v4395_v53  ;;  %v2587_v14 = vpack.c.bf16 %v1257_v1, %v1256_v39  ;;  %v1146_v54 = vsel %vm1130_vm7, %v1129_v19, %v2141_v33  ;;  %v2114_v13 = vrot.slane %v3555_v8, 10  ;;  %v1309_v40 = vld [vmem:[%s4311_s2 + $0x488] sm:$0xff] }
 0x121   :  { %v875_v51 = vrot.slane %v4393_v52, 6  ;;  %v2126_v5 = vrot.slane %v3560_v23, 9  ;;  %v4399_v62 = vpack.c.bf16 %v4397_v9, %v4398_v44  ;;  %v3842_v60 = vsel %vm1147_vm6, %v1146_v54, %v3613_v57  ;;  %v1341_v25 = vld [vmem:[%s4311_s2 + $0x588] sm:$0xff]  ;;  %v1324_v44 = vld [vmem:[%s4311_s2 + $0x500] sm:$0xff] }
 0x122   :  { %2612 = vmatprep.subr.bf16.mxu1 %v4396_v26  ;;  %v1058_v29 = vsel %vm1045_vm1, %v127_v43, %v2080_v56  ;;  %v131_v11 = vrot.slane %v4388_v42, 7  ;;  %v4400_v34 = vrot.slane %v4392_v41, 7  ;;  %v2092_v57 = vrot.slane %v3490_v50, 13  ;;  %v1293_v54 = vld [vmem:[%s4311_s2 + $0x408] sm:$0xff] }
 0x123   :  { %2582 = vmatpush3.bf16.msra.mxu0 %v4399_v62  ;;  %v1075_v32 = vsel %vm1062_vm2, %v1058_v29, %v875_v51  ;;  %v2104_v33 = vrot.slane %v3500_v17, 12  ;;  %v2116_v20 = vrot.slane %v3555_v8, 11  ;;  %v2150_v15 = vrot.slane %v3607_v18, 7  ;;  %v1272_v8 = vld [vmem:[%s4311_s2 + $0x360] sm:$0xff]  ;;  %v1325_v62 = vld [vmem:[%s4311_s2 + $0x508] sm:$0xff]  ;;  %v1343_v29 = vld [vmem:[%s4311_s2 + $0x598] sm:$0xff] }
 0x124   :  { %v847_v35 = vrot.slane %v4400_v34, 7  ;;  %2584 = vmatprep.subr.bf16.mxu0 %v2583_v2  ;;  %2614 = vmatpush3.bf16.msra.mxu1 %v2613_v10  ;;  %v1258_v2 = vld [vmem:[%s4311_s2 + $0x2f0] sm:$0xff]  ;;  %v1092_v0 = vsel %vm1079_vm3, %v1075_v32, %v2102_v47  ;;  %v2128_v31 = vrot.slane %v3560_v23, 10  ;;  %v2619_v17 = vpack.c.bf16 %v1289_v4, %v1288_v28  ;;  %v1273_v10 = vld [vmem:[%s4311_s2 + $0x368] sm:$0xff]  ;;  %v1340_v47 = vld [vmem:[%s4311_s2 + $0x580] sm:$0xff] }
 0x125   :  { %2616 = vmatprep.subr.bf16.mxu1 %v2615_v55  ;;  %v1109_v39 = vsel %vm1096_vm4, %v1092_v0, %v2114_v13  ;;  %v2140_v1 = vrot.slane %v3601_v61, 9  ;;  %v2589_v23 = vpack.c.bf16 %v1241_v12, %v1240_v58  ;;  %v1290_v55 = vld [vmem:[%s4311_s2 + $0x3f0] sm:$0xff]  ;;  %v2591_v37 = vpack.c.bf16 %v1259_v7, %v1258_v2  ;;  %v1312_v12 = vld [vmem:[%s4311_s2 + $0x4a0] sm:$0xff]  ;;  %v1313_v32 = vld [vmem:[%s4311_s2 + $0x4a8] sm:$0xff] }
 0x126   :  { %v1060_v50 = vsel %vm1045_vm1, %v131_v11, %v847_v35  ;;  %v1126_v6 = vsel %vm1113_vm5, %v1109_v39, %v2126_v5  ;;  %v2621_v16 = vpack.c.bf16 %v1273_v10, %v1272_v8  ;;  %v2623_v56 = vpack.c.bf16 %v1291_v24, %v1290_v55  ;;  %v1310_v5 = vld [vmem:[%s4311_s2 + $0x490] sm:$0xff]  ;;  %v1295_v35 = vld [vmem:[%s4311_s2 + $0x418] sm:$0xff]  ;;  %v1344_v7 = vld [vmem:[%s4311_s2 + $0x5a0] sm:$0xff] }
 0x127   :  { %v1077_v59 = vsel %vm1062_vm2, %v1060_v50, %v2092_v57  ;;  %2586 = vmatpush3.bf16.msra.mxu0 %v2585_v38  ;;  %v1243_v38 = vld [vmem:[%s4311_s2 + $0x278] sm:$0xff]  ;;  %v1143_v42 = vsel %vm1130_vm7, %v1126_v6, %v3601_v61  ;;  %v1274_v61 = vld [vmem:[%s4311_s2 + $0x370] sm:$0xff]  ;;  %v2627_v26 = vpack.c.bf16 %v1309_v40, %v1308_v22  ;;  %v2659_v9 = vpack.c.bf16 %v1341_v25, %v1340_v47  ;;  %v1296_v0 = vld [vmem:[%s4311_s2 + $0x420] sm:$0xff] }
 0x128   :  { %v1094_v36 = vsel %vm1079_vm3, %v1077_v59, %v2104_v33  ;;  %2588 = vmatprep.subr.bf16.mxu0 %v2587_v14  ;;  %2618 = vmatpush3.bf16.msra.mxu1 %v2617_v63  ;;  %v3901_v19 = vsel %vm1147_vm6, %v1143_v42, %v2150_v15  ;;  %v1275_v63 = vld [vmem:[%s4311_s2 + $0x378] sm:$0xff]  ;;  %v2593_v51 = vpack.c.bf16 %v1243_v38, %v1242_v49  ;;  %v1292_v14 = vld [vmem:[%s4311_s2 + $0x400] sm:$0xff]  ;;  %v1342_v4 = vld [vmem:[%s4311_s2 + $0x590] sm:$0xff] }
 0x129   :  { %v1111_v43 = vsel %vm1096_vm4, %v1094_v36, %v2116_v20  ;;  %2620 = vmatprep.subr.bf16.mxu1 %v2619_v17  ;;  %v2625_v13 = vpack.c.bf16 %v1275_v63, %v1274_v61  ;;  %v2629_v28 = vpack.c.bf16 %v1293_v54, %v1292_v14  ;;  %v1294_v34 = vld [vmem:[%s4311_s2 + $0x410] sm:$0xff]  ;;  %v2661_v58 = vpack.c.bf16 %v1325_v62, %v1324_v44  ;;  %v1327_v20 = vld [vmem:[%s4311_s2 + $0x518] sm:$0xff]  ;;  %v1328_v8 = vld [vmem:[%s4311_s2 + $0x520] sm:$0xff] }
 0x12a   :  { %v1128_v41 = vsel %vm1113_vm5, %v1111_v43, %v2128_v31  ;;  %v2663_v57 = vpack.c.bf16 %v1343_v29, %v1342_v4  ;;  %v1326_v33 = vld [vmem:[%s4311_s2 + $0x510] sm:$0xff]  ;;  %v2633_v2 = vpack.c.bf16 %v1295_v35, %v1294_v34  ;;  %v2635_v15 = vpack.c.bf16 %v1313_v32, %v1312_v12  ;;  %v1329_v10 = vld [vmem:[%s4311_s2 + $0x528] sm:$0xff]  ;;  %v1299_v55 = vld [vmem:[%s4311_s2 + $0x438] sm:$0xff] }
 0x12b   :  { %v1145_v52 = vsel %vm1130_vm7, %v1128_v41, %v2140_v1  ;;  %2590 = vmatpush3.bf16.msra.mxu0 %v2589_v23  ;;  %v2665_v31 = vpack.c.bf16 %v1327_v20, %v1326_v33  ;;  %v1314_v50 = vld [vmem:[%s4311_s2 + $0x4b0] sm:$0xff]  ;;  %v1347_v1 = vld [vmem:[%s4311_s2 + $0x5b8] sm:$0xff]  ;;  %v2669_v24 = vpack.c.bf16 %v1329_v10, %v1328_v8  ;;  %v1316_v6 = vld [vmem:[%s4311_s2 + $0x4c0] sm:$0xff] }
 0x12c   :  { %v3919_v53 = vsel %vm1147_vm6, %v1145_v52, %v3607_v18  ;;  %2592 = vmatprep.subr.bf16.mxu0 %v2591_v37  ;;  %2622 = vmatpush3.bf16.msra.mxu1 %v2621_v16  ;;  %v1311_v18 = vld [vmem:[%s4311_s2 + $0x498] sm:$0xff]  ;;  %v1346_v39 = vld [vmem:[%s4311_s2 + $0x5b0] sm:$0xff]  ;;  %v1317_v36 = vld [vmem:[%s4311_s2 + $0x4c8] sm:$0xff] }
 0x12d   :  { %2624 = vmatprep.subr.bf16.mxu1 %v2623_v56  ;;  %v2631_v11 = vpack.c.bf16 %v1311_v18, %v1310_v5  ;;  %v1298_v23 = vld [vmem:[%s4311_s2 + $0x430] sm:$0xff]  ;;  %v2671_v37 = vpack.c.bf16 %v1347_v1, %v1346_v39  ;;  %v1331_v38 = vld [vmem:[%s4311_s2 + $0x538] sm:$0xff]  ;;  %v1348_v43 = vld [vmem:[%s4311_s2 + $0x5c0] sm:$0xff]  ;;  %v2643_v22 = vpack.c.bf16 %v1317_v36, %v1316_v6 }
 0x12e   :  { %v1330_v49 = vld [vmem:[%s4311_s2 + $0x530] sm:$0xff]  ;;  %v2641_v42 = vpack.c.bf16 %v1299_v55, %v1298_v23  ;;  %v1349_v16 = vld [vmem:[%s4311_s2 + $0x5c8] sm:$0xff]  ;;  %v1300_v40 = vld [vmem:[%s4311_s2 + $0x440] sm:$0xff] }
 0x12f   :  { %2594 = vmatpush3.bf16.msra.mxu0 %v2593_v51  ;;  %v1301_v41 = vld [vmem:[%s4311_s2 + $0x448] sm:$0xff]  ;;  %v2673_v56 = vpack.c.bf16 %v1331_v38, %v1330_v49  ;;  %v1318_v61 = vld [vmem:[%s4311_s2 + $0x4d0] sm:$0xff]  ;;  %v1319_v63 = vld [vmem:[%s4311_s2 + $0x4d8] sm:$0xff]  ;;  %v2675_v52 = vpack.c.bf16 %v1349_v16, %v1348_v43 }
 0x130   :  { %2628 = vmatprep.subr.bf16.mxu0 %v2627_v26  ;;  %2626 = vmatpush3.bf16.msra.mxu1 %v2625_v13  ;;  %v1332_v51 = vld [vmem:[%s4311_s2 + $0x540] sm:$0xff]  ;;  %v1333_v47 = vld [vmem:[%s4311_s2 + $0x548] sm:$0xff]  ;;  %v2645_v25 = vpack.c.bf16 %v1301_v41, %v1300_v40  ;;  %v1350_v26 = vld [vmem:[%s4311_s2 + $0x5d0] sm:$0xff]  ;;  %v2647_v54 = vpack.c.bf16 %v1319_v63, %v1318_v61 }
 0x131   :  { %2660 = vmatprep.subr.bf16.mxu1 %v2659_v9  ;;  %v1351_v14 = vld [vmem:[%s4311_s2 + $0x5d8] sm:$0xff]  ;;  %v1302_v13 = vld [vmem:[%s4311_s2 + $0x450] sm:$0xff]  ;;  %v2677_v18 = vpack.c.bf16 %v1333_v47, %v1332_v51  ;;  %v1320_v9 = vld [vmem:[%s4311_s2 + $0x4e0] sm:$0xff] }
 0x132   :  { %1632 = vmatmul.mubr.f32.vlgmr.msra.gmra.mrb[10].mxu0 %v3646_v45  ;;  %v1345_v45 = vld [vmem:[%s4311_s2 + $0x5a8] sm:$0xff]  ;;  %v1303_v5 = vld [vmem:[%s4311_s2 + $0x458] sm:$0xff]  ;;  %v2679_v62 = vpack.c.bf16 %v1351_v14, %v1350_v26 }
 0x133   :  { %2630 = vmatpush3.bf16.msra.mxu0 %v2629_v28  ;;  %1771 = vmatprep.mubr.f32.mxu0 %v3668_v27  ;;  %v1297_v27 = vld [vmem:[%s4311_s2 + $0x428] sm:$0xff]  ;;  %v2667_v17 = vpack.c.bf16 %v1345_v45, %v1344_v7  ;;  %v1334_v28 = vld [vmem:[%s4311_s2 + $0x550] sm:$0xff]  ;;  %v1335_v4 = vld [vmem:[%s4311_s2 + $0x558] sm:$0xff]  ;;  %v2649_v29 = vpack.c.bf16 %v1303_v5, %v1302_v13 }
 0x134   :  { %1702 = vmatmul.mubr.f32.vlgmr.msra.gmra.mrb[10].mxu1 %v3649_v46  ;;  %2632 = vmatprep.subr.bf16.mxu0 %v2631_v11  ;;  %v1315_v46 = vld [vmem:[%s4311_s2 + $0x4b8] sm:$0xff]  ;;  %v1321_v44 = vld [vmem:[%s4311_s2 + $0x4e8] sm:$0xff]  ;;  %v1352_v11 = vld [vmem:[%s4311_s2 + $0x5e0] sm:$0xff]  ;;  %v2681_v32 = vpack.c.bf16 %v1335_v4, %v1334_v28 }
 0x135   :  { %2662 = vmatpush3.bf16.msra.mxu1 %v2661_v58  ;;  %1841 = vmatprep.mubr.f32.mxu1 %v3680_v30  ;;  %v2637_v30 = vpack.c.bf16 %v1297_v27, %v1296_v0  ;;  %v2639_v59 = vpack.c.bf16 %v1315_v46, %v1314_v50  ;;  %v1353_v34 = vld [vmem:[%s4311_s2 + $0x5e8] sm:$0xff]  ;;  %v2651_v35 = vpack.c.bf16 %v1321_v44, %v1320_v9  ;;  %v1304_v58 = vld [vmem:[%s4311_s2 + $0x460] sm:$0xff]  ;;  %v1323_v33 = vld [vmem:[%s4311_s2 + $0x4f8] sm:$0xff] }
 0x136   :  { %2664 = vmatprep.subr.bf16.mxu1 %v2663_v57  ;;  %v1305_v12 = vld [vmem:[%s4311_s2 + $0x468] sm:$0xff]  ;;  %v1322_v57 = vld [vmem:[%s4311_s2 + $0x4f0] sm:$0xff]  ;;  %v2683_v20 = vpack.c.bf16 %v1353_v34, %v1352_v11  ;;  %v1355_v0 = vld [vmem:[%s4311_s2 + $0x5f8] sm:$0xff] }
 0x137   :  { %2634 = vmatpush3.bf16.msra.mxu0 %v2633_v2  ;;  %v1336_v2 = vld [vmem:[%s4311_s2 + $0x560] sm:$0xff]  ;;  %v1337_v7 = vld [vmem:[%s4311_s2 + $0x568] sm:$0xff]  ;;  %v2653_v45 = vpack.c.bf16 %v1305_v12, %v1304_v58  ;;  %v2655_v27 = vpack.c.bf16 %v1323_v33, %v1322_v57  ;;  %v1307_v50 = vld [vmem:[%s4311_s2 + $0x478] sm:$0xff] }
 0x138   :  { %2636 = vmatprep.subr.bf16.mxu0 %v2635_v15  ;;  %v1354_v15 = vld [vmem:[%s4311_s2 + $0x5f0] sm:$0xff]  ;;  %v2685_v46 = vpack.c.bf16 %v1337_v7, %v1336_v2  ;;  %v1373_v8 = vld [vmem:[%s4311_s2 + $0x688] sm:$0xff]  ;;  %v1339_v39 = vld [vmem:[%s4311_s2 + $0x578] sm:$0xff] }
 0x139   :  { %2666 = vmatpush3.bf16.msra.mxu1 %v2665_v31  ;;  %v1306_v31 = vld [vmem:[%s4311_s2 + $0x470] sm:$0xff]  ;;  %v2687_v10 = vpack.c.bf16 %v1355_v0, %v1354_v15  ;;  %v1405_v23 = vld [vmem:[%s4311_s2 + $0x788] sm:$0xff]  ;;  %v1375_v49 = vld [vmem:[%s4311_s2 + $0x698] sm:$0xff] }
 0x13a   :  { %2668 = vmatprep.subr.bf16.mxu1 %v2667_v17  ;;  %v1372_v17 = vld [vmem:[%s4311_s2 + $0x680] sm:$0xff]  ;;  %v2657_v1 = vpack.c.bf16 %v1307_v50, %v1306_v31  ;;  %v1357_v6 = vld [vmem:[%s4311_s2 + $0x608] sm:$0xff]  ;;  %v1407_v40 = vld [vmem:[%s4311_s2 + $0x798] sm:$0xff] }
 0x13b   :  { %2638 = vmatpush3.bf16.msra.mxu0 %v2637_v30  ;;  %v1338_v30 = vld [vmem:[%s4311_s2 + $0x570] sm:$0xff]  ;;  %v2691_v55 = vpack.c.bf16 %v1373_v8, %v1372_v17  ;;  %v1389_v43 = vld [vmem:[%s4311_s2 + $0x708] sm:$0xff]  ;;  %v1359_v61 = vld [vmem:[%s4311_s2 + $0x618] sm:$0xff] }
 0x13c   :  { %2640 = vmatprep.subr.bf16.mxu0 %v2639_v59  ;;  %v1404_v59 = vld [vmem:[%s4311_s2 + $0x780] sm:$0xff]  ;;  %v2689_v36 = vpack.c.bf16 %v1339_v39, %v1338_v30  ;;  %v1377_v51 = vld [vmem:[%s4311_s2 + $0x6a8] sm:$0xff]  ;;  %v1391_v26 = vld [vmem:[%s4311_s2 + $0x718] sm:$0xff] }
 0x13d   :  { %2670 = vmatpush3.bf16.msra.mxu1 %v2669_v24  ;;  %v1356_v24 = vld [vmem:[%s4311_s2 + $0x600] sm:$0xff]  ;;  %v2723_v38 = vpack.c.bf16 %v1405_v23, %v1404_v59  ;;  %v1378_v9 = vld [vmem:[%s4311_s2 + $0x6b0] sm:$0xff]  ;;  %v1393_v28 = vld [vmem:[%s4311_s2 + $0x728] sm:$0xff] }
 0x13e   :  { %2672 = vmatprep.subr.bf16.mxu1 %v2671_v37  ;;  %v1374_v37 = vld [vmem:[%s4311_s2 + $0x690] sm:$0xff]  ;;  %v2693_v16 = vpack.c.bf16 %v1357_v6, %v1356_v24  ;;  %v1360_v5 = vld [vmem:[%s4311_s2 + $0x620] sm:$0xff] }
 0x13f   :  { %2642 = vmatpush3.bf16.msra.mxu0 %v2641_v42  ;;  %v1388_v42 = vld [vmem:[%s4311_s2 + $0x700] sm:$0xff]  ;;  %v2695_v41 = vpack.c.bf16 %v1375_v49, %v1374_v37  ;;  %v1410_v4 = vld [vmem:[%s4311_s2 + $0x7b0] sm:$0xff] }
 0x140   :  { %2644 = vmatprep.subr.bf16.mxu0 %v2643_v22  ;;  %v1406_v22 = vld [vmem:[%s4311_s2 + $0x790] sm:$0xff]  ;;  %v2725_v63 = vpack.c.bf16 %v1389_v43, %v1388_v42  ;;  %v1380_v12 = vld [vmem:[%s4311_s2 + $0x6c0] sm:$0xff] }
 0x141   :  { %2674 = vmatpush3.bf16.msra.mxu1 %v2673_v56  ;;  %v1358_v56 = vld [vmem:[%s4311_s2 + $0x610] sm:$0xff]  ;;  %v2727_v47 = vpack.c.bf16 %v1407_v40, %v1406_v22  ;;  %v1412_v7 = vld [vmem:[%s4311_s2 + $0x7c0] sm:$0xff] }
 0x142   :  { %2676 = vmatprep.subr.bf16.mxu1 %v2675_v52  ;;  %v1376_v52 = vld [vmem:[%s4311_s2 + $0x6a0] sm:$0xff]  ;;  %v2697_v14 = vpack.c.bf16 %v1359_v61, %v1358_v56  ;;  %v1362_v34 = vld [vmem:[%s4311_s2 + $0x630] sm:$0xff] }
 0x143   :  { %2646 = vmatpush3.bf16.msra.mxu0 %v2645_v25  ;;  %v1390_v25 = vld [vmem:[%s4311_s2 + $0x710] sm:$0xff]  ;;  %v2699_v13 = vpack.c.bf16 %v1377_v51, %v1376_v52  ;;  %v1364_v0 = vld [vmem:[%s4311_s2 + $0x640] sm:$0xff] }
 0x144   :  { %2648 = vmatprep.subr.bf16.mxu0 %v2647_v54  ;;  %v1408_v54 = vld [vmem:[%s4311_s2 + $0x7a0] sm:$0xff]  ;;  %v1394_v33 = vld [vmem:[%s4311_s2 + $0x730] sm:$0xff] }
 0x145   :  { %2678 = vmatpush3.bf16.msra.mxu1 %v2677_v18  ;;  %v2729_v18 = vpack.c.bf16 %v1391_v26, %v1390_v25  ;;  %v1382_v50 = vld [vmem:[%s4311_s2 + $0x6d0] sm:$0xff]  ;;  %v1396_v8 = vld [vmem:[%s4311_s2 + $0x740] sm:$0xff] }
 0x146   :  { %2680 = vmatprep.subr.bf16.mxu1 %v2679_v62  ;;  %v1392_v62 = vld [vmem:[%s4311_s2 + $0x720] sm:$0xff]  ;;  %v1414_v39 = vld [vmem:[%s4311_s2 + $0x7d0] sm:$0xff] }
 0x147   :  { %2650 = vmatpush3.bf16.msra.mxu0 %v2649_v29  ;;  %v1411_v29 = vld [vmem:[%s4311_s2 + $0x7b8] sm:$0xff]  ;;  %v2733_v58 = vpack.c.bf16 %v1393_v28, %v1392_v62  ;;  %v1366_v23 = vld [vmem:[%s4311_s2 + $0x650] sm:$0xff]  ;;  %v1384_v6 = vld [vmem:[%s4311_s2 + $0x6e0] sm:$0xff] }
 0x148   :  { %2652 = vmatprep.subr.bf16.mxu0 %v2651_v35  ;;  %v1363_v35 = vld [vmem:[%s4311_s2 + $0x638] sm:$0xff]  ;;  %v2735_v57 = vpack.c.bf16 %v1411_v29, %v1410_v4  ;;  %v1398_v49 = vld [vmem:[%s4311_s2 + $0x750] sm:$0xff]  ;;  %v1416_v43 = vld [vmem:[%s4311_s2 + $0x7e0] sm:$0xff] }
 0x149   :  { %2682 = vmatpush3.bf16.msra.mxu1 %v2681_v32  ;;  %v1381_v32 = vld [vmem:[%s4311_s2 + $0x6c8] sm:$0xff]  ;;  %v2705_v2 = vpack.c.bf16 %v1363_v35, %v1362_v34  ;;  %v1368_v40 = vld [vmem:[%s4311_s2 + $0x660] sm:$0xff]  ;;  %v1386_v61 = vld [vmem:[%s4311_s2 + $0x6f0] sm:$0xff] }
 0x14a   :  { %2684 = vmatprep.subr.bf16.mxu1 %v2683_v20  ;;  %v1395_v20 = vld [vmem:[%s4311_s2 + $0x738] sm:$0xff]  ;;  %v2707_v15 = vpack.c.bf16 %v1381_v32, %v1380_v12  ;;  %v1400_v51 = vld [vmem:[%s4311_s2 + $0x760] sm:$0xff]  ;;  %v1418_v26 = vld [vmem:[%s4311_s2 + $0x7f0] sm:$0xff] }
 0x14b   :  { %2654 = vmatpush3.bf16.msra.mxu0 %v2653_v45  ;;  %v1413_v45 = vld [vmem:[%s4311_s2 + $0x7c8] sm:$0xff]  ;;  %v2737_v31 = vpack.c.bf16 %v1395_v20, %v1394_v33  ;;  %v2154_v28 = vld [vmem:[%s4312_s3] ss:$0 sm:$0xff] }
 0x14c   :  { %2656 = vmatprep.subr.bf16.mxu0 %v2655_v27  ;;  %v1365_v27 = vld [vmem:[%s4311_s2 + $0x648] sm:$0xff]  ;;  %v2739_v17 = vpack.c.bf16 %v1413_v45, %v1412_v7 }
 0x14d   :  { %2686 = vmatpush3.bf16.msra.mxu1 %v2685_v46  ;;  %v1383_v46 = vld [vmem:[%s4311_s2 + $0x6d8] sm:$0xff]  ;;  %v2709_v30 = vpack.c.bf16 %v1365_v27, %v1364_v0 }
 0x14e   :  { %2688 = vmatprep.subr.bf16.mxu1 %v2687_v10  ;;  %v1397_v10 = vld [vmem:[%s4311_s2 + $0x748] sm:$0xff]  ;;  %v2711_v59 = vpack.c.bf16 %v1383_v46, %v1382_v50 }
 0x14f   :  { %2658 = vmatpush3.bf16.msra.mxu0 %v2657_v1  ;;  %v1415_v1 = vld [vmem:[%s4311_s2 + $0x7d8] sm:$0xff]  ;;  %v2741_v24 = vpack.c.bf16 %v1397_v10, %v1396_v8 }
 0x150   :  { %2692 = vmatprep.subr.bf16.mxu0 %v2691_v55  ;;  %v1367_v55 = vld [vmem:[%s4311_s2 + $0x658] sm:$0xff]  ;;  %v2743_v37 = vpack.c.bf16 %v1415_v1, %v1414_v39 }
 0x151   :  { %2690 = vmatpush3.bf16.msra.mxu1 %v2689_v36  ;;  %v1385_v36 = vld [vmem:[%s4311_s2 + $0x6e8] sm:$0xff]  ;;  %v2713_v42 = vpack.c.bf16 %v1367_v55, %v1366_v23 }
 0x152   :  { %1772 = vmatmul.mubr.f32.vlgmr.msra.gmra.mrb[12].mxu0 %v3741_v3  ;;  %2724 = vmatprep.subr.bf16.mxu1 %v2723_v38  ;;  %v1409_v3 = vld [vmem:[%s4311_s2 + $0x7a8] sm:$0xff]  ;;  %v1399_v38 = vld [vmem:[%s4311_s2 + $0x758] sm:$0xff]  ;;  %v2715_v22 = vpack.c.bf16 %v1385_v36, %v1384_v6 }
 0x153   :  { %2694 = vmatpush3.bf16.msra.mxu0 %v2693_v16  ;;  %1911 = vmatprep.mubr.f32.mxu0 %v3813_v48  ;;  %v1361_v48 = vld [vmem:[%s4311_s2 + $0x628] sm:$0xff]  ;;  %v2731_v44 = vpack.c.bf16 %v1409_v3, %v1408_v54  ;;  %v2745_v56 = vpack.c.bf16 %v1399_v38, %v1398_v49  ;;  %v1370_v3 = vld [vmem:[%s4311_s2 + $0x670] sm:$0xff] }
 0x154   :  { %1842 = vmatmul.mubr.f32.vlgmr.msra.gmra.mrb[12].mxu1 %v3782_v21  ;;  %2696 = vmatprep.subr.bf16.mxu0 %v2695_v41  ;;  %v1379_v21 = vld [vmem:[%s4311_s2 + $0x6b8] sm:$0xff]  ;;  %v1417_v16 = vld [vmem:[%s4311_s2 + $0x7e8] sm:$0xff] }
 0x155   :  { %2726 = vmatpush3.bf16.msra.mxu1 %v2725_v63  ;;  %1981 = vmatprep.mubr.f32.mxu1 %v3842_v60  ;;  %v2701_v60 = vpack.c.bf16 %v1361_v48, %v1360_v5  ;;  %v2703_v11 = vpack.c.bf16 %v1379_v21, %v1378_v9  ;;  %v1369_v41 = vld [vmem:[%s4311_s2 + $0x668] sm:$0xff]  ;;  %v1387_v63 = vld [vmem:[%s4311_s2 + $0x6f8] sm:$0xff]  ;;  %v2747_v52 = vpack.c.bf16 %v1417_v16, %v1416_v43 }
 0x156   :  { %2728 = vmatprep.subr.bf16.mxu1 %v2727_v47  ;;  %v1401_v47 = vld [vmem:[%s4311_s2 + $0x768] sm:$0xff]  ;;  %v2717_v25 = vpack.c.bf16 %v1369_v41, %v1368_v40  ;;  %v2719_v54 = vpack.c.bf16 %v1387_v63, %v1386_v61  ;;  %v1403_v9 = vld [vmem:[%s4311_s2 + $0x778] sm:$0xff] }
 0x157   :  { %2698 = vmatpush3.bf16.msra.mxu0 %v2697_v14  ;;  %v1419_v14 = vld [vmem:[%s4311_s2 + $0x7f8] sm:$0xff]  ;;  %v2749_v5 = vpack.c.bf16 %v1401_v47, %v1400_v51 }
 0x158   :  { %2700 = vmatprep.subr.bf16.mxu0 %v2699_v13  ;;  %v1371_v13 = vld [vmem:[%s4311_s2 + $0x678] sm:$0xff]  ;;  %v2751_v48 = vpack.c.bf16 %v1419_v14, %v1418_v26 }
 0x159   :  { %2730 = vmatpush3.bf16.msra.mxu1 %v2729_v18  ;;  %v1402_v18 = vld [vmem:[%s4311_s2 + $0x770] sm:$0xff]  ;;  %v2721_v21 = vpack.c.bf16 %v1371_v13, %v1370_v3 }
 0x15a   :  { %2732 = vmatprep.subr.bf16.mxu1 %v2731_v44  ;;  %v2753_v44 = vpack.c.bf16 %v1403_v9, %v1402_v18 }
 0x15b   :  { %2702 = vmatpush3.bf16.msra.mxu0 %v2701_v60 }
 0x15c   :  { %2704 = vmatprep.subr.bf16.mxu0 %v2703_v11 }
 0x15d   :  { %2734 = vmatpush3.bf16.msra.mxu1 %v2733_v58 }
 0x15e   :  { %2736 = vmatprep.subr.bf16.mxu1 %v2735_v57 }
 0x15f   :  { %2706 = vmatpush3.bf16.msra.mxu0 %v2705_v2 }
 0x160   :  { %2708 = vmatprep.subr.bf16.mxu0 %v2707_v15 }
 0x161   :  { %2738 = vmatpush3.bf16.msra.mxu1 %v2737_v31 }
 0x162   :  { %2740 = vmatprep.subr.bf16.mxu1 %v2739_v17 }
 0x163   :  { %2710 = vmatpush3.bf16.msra.mxu0 %v2709_v30 }
 0x164   :  { %2712 = vmatprep.subr.bf16.mxu0 %v2711_v59 }
 0x165   :  { %2742 = vmatpush3.bf16.msra.mxu1 %v2741_v24 }
 0x166   :  { %2744 = vmatprep.subr.bf16.mxu1 %v2743_v37 }
 0x167   :  { %2714 = vmatpush3.bf16.msra.mxu0 %v2713_v42 }
 0x168   :  { %2716 = vmatprep.subr.bf16.mxu0 %v2715_v22 }
 0x169   :  { %2746 = vmatpush3.bf16.msra.mxu1 %v2745_v56 }
 0x16a   :  { %2748 = vmatprep.subr.bf16.mxu1 %v2747_v52 }
 0x16b   :  { %2718 = vmatpush3.bf16.msra.mxu0 %v2717_v25 }
 0x16c   :  { %2720 = vmatprep.subr.bf16.mxu0 %v2719_v54 }
 0x16d   :  { %2750 = vmatpush3.bf16.msra.mxu1 %v2749_v5 }
 0x16e   :  { %2752 = vmatprep.subr.bf16.mxu1 %v2751_v48 }
 0x16f   :  { %2722 = vmatpush3.bf16.msra.mxu0 %v2721_v21 }
 0x171   :  { %2754 = vmatpush3.bf16.msra.mxu1 %v2753_v44 }
 0x172   :  { %1912 = vmatmul.mubr.f32.vlgmr.msra.gmra.mrb[14].mxu0 %v3901_v19 }
 0x174   :  { %1982 = vmatmul.mubr.f32.vlgmr.msra.gmra.mrb[14].mxu1 %v3919_v53 }
 0x1de   :  { %v2187_v62 = vpop.f32.mrb[8].mxu0 }
 0x1df   :  { %v2188_v60 = vpop.f32.mrb[9].mxu0 }
 0x1e0   :  { %v2189_v4 = vadd.f32 %v2188_v60, %v2187_v62  ;;  %v2222_v29 = vpop.f32.mrb[8].mxu1 }
 0x1e1   :  { %v2223_v11 = vpop.f32.mrb[9].mxu1 }
 0x1e2   :  { %v1494_v34 = vadd.f32 %v2189_v4, %v2154_v28  ;;  %v2224_v35 = vadd.f32 %v2223_v11, %v2222_v29 }
 0x1e4   :  { %v1564_v58 = vadd.f32 %v2224_v35, %v1494_v34 }
 0x205   :  { %v2257_v12 = vpop.f32.mrb[10].mxu0 }
 0x206   :  { %v2258_v32 = vpop.f32.mrb[11].mxu0 }
 0x207   :  { %v2259_v57 = vadd.f32 %v2258_v32, %v2257_v12  ;;  %v2292_v33 = vpop.f32.mrb[10].mxu1 }
 0x208   :  { %v2293_v20 = vpop.f32.mrb[11].mxu1 }
 0x209   :  { %v1634_v19 = vadd.f32 %v2259_v57, %v1564_v58  ;;  %v2294_v2 = vadd.f32 %v2293_v20, %v2292_v33 }
 0x20b   :  { %v1704_v53 = vadd.f32 %v2294_v2, %v1634_v19 }
 0x225   :  { %v2327_v7 = vpop.f32.mrb[12].mxu0 }
 0x226   :  { %v2328_v45 = vpop.f32.mrb[13].mxu0 }
 0x227   :  { %v2329_v15 = vadd.f32 %v2328_v45, %v2327_v7  ;;  %v2362_v0 = vpop.f32.mrb[12].mxu1 }
 0x228   :  { %v2363_v27 = vpop.f32.mrb[13].mxu1 }
 0x229   :  { %v1774_v31 = vadd.f32 %v2329_v15, %v1704_v53  ;;  %v2364_v50 = vadd.f32 %v2363_v27, %v2362_v0 }
 0x22b   :  { %v1844_v46 = vadd.f32 %v2364_v50, %v1774_v31 }
 0x245   :  { %v2397_v17 = vpop.f32.mrb[14].mxu0 }
 0x246   :  { %v2398_v8 = vpop.f32.mrb[15].mxu0 }
 0x247   :  { %v2399_v10 = vadd.f32 %v2398_v8, %v2397_v17  ;;  %v2432_v30 = vpop.f32.mrb[14].mxu1 }
 0x248   :  { %v2433_v39 = vpop.f32.mrb[15].mxu1 }
 0x249   :  { %v1914_v1 = vadd.f32 %v2399_v10, %v1844_v46  ;;  %v2434_v59 = vadd.f32 %v2433_v39, %v2432_v30 }
 0x24b   :  { %v1984_v23 = vadd.f32 %v2434_v59, %v1914_v1 }
 0x24d   :  { %1987 = vst [vmem:[%s4313_s4] sm:$0xff] %v1984_v23 }

</bundles_post_ra>
